<compile_context>
chip_gen: v5e
topology: v5e:2x2
jax: 0.10.0
libtpu: 0.0.40
codegen_flags: <defaults>
</compile_context>

<pallas_src>
import functools

import jax
import jax.numpy as jnp
import numpy as np
from jax.experimental import pallas as pl
from jax.experimental.pallas import tpu as pltpu


# ----------------------------- fused Pallas kernel ---------------------------


def _make_fused_lstm_kernel(n_layers, seq_len, batch_p, hidden_dim):
    T, Bp, H = seq_len, batch_p, hidden_dim

    def kernel(*refs):
        it = iter(refs)
        x_ref = next(it)                                       # (T*Bp, E) time-major embeds
        h0_ref = next(it)                                       # (L, Bp, H)
        c0_ref = next(it)                                       # (L, Bp, H)
        wih0_ref = next(it)                                     # (E, 4H)   layer 0
        whh0_ref = next(it)                                     # (H, 4H)   layer 0
        b0_ref = next(it)                                       # (1, 4H)   layer 0
        wcat_refs = [next(it) for _ in range(n_layers - 1)]     # (2H, 4H)  [W_ih ; W_hh]
        bl_refs = [next(it) for _ in range(n_layers - 1)]       # (1, 4H)
        wfc_ref = next(it)                                      # (H, 1)    last FC column
        bfc_ref = next(it)                                      # (1, 1)
        sig_ref = next(it)                                      # (Bp, 1)   out
        hT_ref = next(it)                                       # (L, Bp, H) out
        cT_ref = next(it)                                       # (L, Bp, H) out

        f32 = jnp.float32

        # Hoisted input projection for layer 0: one (T*Bp, E) @ (E, 4H) matmul, bias fused.
        proj0 = jnp.dot(x_ref[...], wih0_ref[...],
                        preferred_element_type=f32) + b0_ref[...]
        whh0 = whh0_ref[...]                                    # resident across all steps
        wcat = [w[...] for w in wcat_refs]
        bl = [b[...] for b in bl_refs]

        # Lane mask, built ONCE (JAX does not CSE broadcast_in_dim): lanes [0, 3H) use
        # sigmoid (i, f, o), lanes [3H, 4H) use tanh (g).
        lane = jax.lax.broadcasted_iota(jnp.int32, (Bp, 4 * H), 1)
        sig_mask = lane < 3 * H

        def cell(gates, c_prev):
            # Full-128-lane activations (2 EUP pushes) + one VPU select.
            act = jnp.where(sig_mask, jax.nn.sigmoid(gates), jnp.tanh(gates))
            # Packing is [i | f | o | g]; align f/o/g to lanes [0, H) via XLU rolls
            # (positive shift == np.roll semantics), then take lane-0 slices only.
            i_g = act[:, :H]
            f_g = pltpu.roll(act, shift=3 * H, axis=1)[:, :H]
            o_g = pltpu.roll(act, shift=2 * H, axis=1)[:, :H]
            g_g = pltpu.roll(act, shift=1 * H, axis=1)[:, :H]
            c_new = f_g * c_prev + i_g * g_g
            h_new = o_g * jnp.tanh(c_new)
            return h_new, c_new

        h = [h0_ref[l] for l in range(n_layers)]
        c = [c0_ref[l] for l in range(n_layers)]

        # Wavefront schedule (statically unrolled): at wave w, layer l runs t = w - l.
        # Layers are visited top-down so layer l reads h[l-1] from the PREVIOUS wave
        # (i.e. h_{l-1, t}) before layer l-1 is updated in this wave.
        for w in range(T + n_layers - 1):
            for l in range(n_layers - 1, -1, -1):
                t = w - l
                if t < 0 or t >= T:
                    continue
                if l == 0:
                    gates = proj0[t * Bp:(t + 1) * Bp, :] + jnp.dot(
                        h[0], whh0, preferred_element_type=f32)
                else:
                    # Fused input+recurrent projection: [h_{l-1,t} | h_{l,t-1}] @ [Wih;Whh]
                    lhs = jnp.concatenate([h[l - 1], h[l]], axis=1)      # (Bp, 2H)
                    gates = jnp.dot(lhs, wcat[l - 1],
                                    preferred_element_type=f32) + bl[l - 1]
                h[l], c[l] = cell(gates, c[l])

        # Final states written once (never touched per step).
        for l in range(n_layers):
            hT_ref[l] = h[l]
            cT_ref[l] = c[l]

        # FC + sigmoid only on the final hidden state of the last layer, last column only.
        z = jnp.dot(h[n_layers - 1], wfc_ref[...],
                    preferred_element_type=f32) + bfc_ref[...]
        sig_ref[...] = jax.nn.sigmoid(z)

    return kernel


# --------------------------------- wrapper -----------------------------------


@functools.partial(jax.jit, static_argnames=("n_layers", "hidden_dim"))
def lstm_forward(x_tokens, hidden, params, *, n_layers, hidden_dim):
    """Matches LSTM.forward(x, hidden) of the PyTorch module."""
    B, T = x_tokens.shape
    E = params["embedding"].shape[1]
    Bp = ((B + 7) // 8) * 8                       # pad batch to a full sublane tile

    # embedding lookup (gather) kept as XLA glue
    embeds = jnp.take(params["embedding"], x_tokens, axis=0)            # (B, T, E)
    x_tm = jnp.transpose(embeds, (1, 0, 2))                             # (T, B, E)
    x_tm = jnp.pad(x_tm, ((0, 0), (0, Bp - B), (0, 0)))                 # (T, Bp, E)
    x2d = x_tm.reshape(T * Bp, E)                                       # time-major flat

    h_in, c_in = hidden                                                 # (L, B, H) each
    h_p = jnp.pad(h_in, ((0, 0), (0, Bp - B), (0, 0)))
    c_p = jnp.pad(c_in, ((0, 0), (0, Bp - B), (0, 0)))

    # Layers >= 1: concatenated [W_ih ; W_hh] for the fused wavefront matmul.
    wcat = [jnp.concatenate([params["wih_t"][l], params["whh_t"][l]], axis=0)
            for l in range(1, n_layers)]

    # Only the FC column the module actually consumes.
    wfc_col = params["wfc_t"][:, -1:]                                   # (H, 1)
    bfc_col = params["bfc"][:, -1:]                                     # (1, 1)

    kernel = _make_fused_lstm_kernel(n_layers, T, Bp, hidden_dim)
    sig_full, hT, cT = pl.pallas_call(
        kernel,
        out_shape=[
            jax.ShapeDtypeStruct((Bp, 1), jnp.float32),
            jax.ShapeDtypeStruct((n_layers, Bp, hidden_dim), jnp.float32),
            jax.ShapeDtypeStruct((n_layers, Bp, hidden_dim), jnp.float32),
        ],
    )(x2d, h_p, c_p,
      params["wih_t"][0], params["whh_t"][0], params["bias"][0],
      *wcat, *params["bias"][1:],
      wfc_col, bfc_col)

    # Drop padded batch rows; never feed them back as state.
    sigmoid_out = sig_full[:B, 0]                                       # (B,)
    return sigmoid_out, (hT[:, :B, :], cT[:, :B, :])


# ------------------------------ parameter init --------------------------------


def init_params(key, vocab_size, output_size, embedding_dim, hidden_dim,
                n_layers):
    keys = jax.random.split(key, 4 + 4 * n_layers)
    k = 1.0 / np.sqrt(hidden_dim)
    params = {}
    params["embedding"] = jax.random.normal(
        keys[0], (vocab_size, embedding_dim), jnp.float32)

    wih_t, whh_t, bias = [], [], []
    for l in range(n_layers):
        in_dim = embedding_dim if l == 0 else hidden_dim
        kw = keys[4 + 4 * l: 4 + 4 * (l + 1)]
        # Gate-column order is [i | f | o | g] (PyTorch packs [i|f|g|o]); weights are
        # randomly initialized here so only internal consistency matters. If loading
        # real PyTorch weights, permute the four H-wide blocks accordingly.
        w_ih = jax.random.uniform(kw[0], (in_dim, 4 * hidden_dim),
                                  jnp.float32, -k, k)
        w_hh = jax.random.uniform(kw[1], (hidden_dim, 4 * hidden_dim),
                                  jnp.float32, -k, k)
        b_ih = jax.random.uniform(kw[2], (4 * hidden_dim,), jnp.float32, -k, k)
        b_hh = jax.random.uniform(kw[3], (4 * hidden_dim,), jnp.float32, -k, k)
        wih_t.append(w_ih)                         # (in_dim, 4H)
        whh_t.append(w_hh)                         # (H, 4H)
        bias.append((b_ih + b_hh)[None, :])        # (1, 4H)
    params["wih_t"] = wih_t
    params["whh_t"] = whh_t
    params["bias"] = bias

    w_fc = jax.random.uniform(keys[1], (hidden_dim, output_size),
                              jnp.float32, -k, k)
    b_fc = jax.random.uniform(keys[2], (output_size,), jnp.float32, -k, k)
    params["wfc_t"] = w_fc                         # (H, O)
    params["bfc"] = b_fc[None, :]                  # (1, O)
    return params


# -------------------------------- reference -----------------------------------


def ref_forward(x_tokens, hidden, params, n_layers, hidden_dim):
    """Pure-JAX reference: full PyTorch-equivalent path (all timesteps through FC)."""
    B, T = x_tokens.shape
    H = hidden_dim
    embeds = jnp.take(params["embedding"], x_tokens, axis=0)   # (B, T, E)
    h, c = list(hidden[0]), list(hidden[1])
    layer_in = embeds
    for l in range(n_layers):
        ht, ct = h[l], c[l]
        hs = []
        for t in range(T):
            gates = (layer_in[:, t] @ params["wih_t"][l]
                     + ht @ params["whh_t"][l] + params["bias"][l][0])
            i_g = jax.nn.sigmoid(gates[:, 0:H])
            f_g = jax.nn.sigmoid(gates[:, H:2 * H])
            o_g = jax.nn.sigmoid(gates[:, 2 * H:3 * H])
            g_g = jnp.tanh(gates[:, 3 * H:4 * H])
            ct = f_g * ct + i_g * g_g
            ht = o_g * jnp.tanh(ct)
            hs.append(ht)
        layer_in = jnp.stack(hs, axis=1)
        h[l], c[l] = ht, ct
    flat = layer_in.reshape(-1, hidden_dim)                    # batch-first flatten
    out = jax.nn.sigmoid(flat @ params["wfc_t"] + params["bfc"])
    sig = out.reshape(B, -1)[:, -1]
    return sig, (jnp.stack(h), jnp.stack(c))


# ----------------------------------- main --------------------------------------


if __name__ == "__main__":
    vocab_size = 50
    output_size = 1
    embedding_dim = 32
    hidden_dim = 32
    n_layers = 2
    batch = 2
    seq_len = 8

    key = jax.random.PRNGKey(0)
    k_par, k_tok = jax.random.split(key)
    params = init_params(k_par, vocab_size, output_size, embedding_dim,
                         hidden_dim, n_layers)

    x = jax.random.randint(k_tok, (batch, seq_len), 0, vocab_size, jnp.int32)
    hidden = (jnp.zeros((n_layers, batch, hidden_dim), jnp.float32),
              jnp.zeros((n_layers, batch, hidden_dim), jnp.float32))

    sig, (h_out, c_out) = lstm_forward(x, hidden, params,
                                       n_layers=n_layers,
                                       hidden_dim=hidden_dim)
    jax.block_until_ready((sig, h_out, c_out))

    sig_ref, (h_ref, c_ref) = ref_forward(x, hidden, params, n_layers,
                                          hidden_dim)
    np.testing.assert_allclose(np.asarray(sig), np.asarray(sig_ref),
                               rtol=1e-4, atol=1e-4)
    np.testing.assert_allclose(np.asarray(h_out), np.asarray(h_ref),
                               rtol=1e-4, atol=1e-4)
    np.testing.assert_allclose(np.asarray(c_out), np.asarray(c_ref),
                               rtol=1e-4, atol=1e-4)

    assert sig.shape == (batch,)
    assert h_out.shape == (n_layers, batch, hidden_dim)
    assert c_out.shape == (n_layers, batch, hidden_dim)
    print("KERNEL_OK")
</pallas_src>

<mosaic_0001>
module attributes {stable_mosaic.version = 11 : i64} {
  func.func @kernel(%arg0: memref<64x32xf32, #tpu.memory_space<vmem>>, %arg1: memref<2x8x32xf32, #tpu.memory_space<vmem>>, %arg2: memref<2x8x32xf32, #tpu.memory_space<vmem>>, %arg3: memref<32x128xf32, #tpu.memory_space<vmem>>, %arg4: memref<32x128xf32, #tpu.memory_space<vmem>>, %arg5: memref<1x128xf32, #tpu.memory_space<vmem>>, %arg6: memref<64x128xf32, #tpu.memory_space<vmem>>, %arg7: memref<1x128xf32, #tpu.memory_space<vmem>>, %arg8: memref<32x1xf32, #tpu.memory_space<vmem>>, %arg9: memref<1x1xf32, #tpu.memory_space<vmem>>, %arg10: memref<8x1xf32, #tpu.memory_space<vmem>>, %arg11: memref<2x8x32xf32, #tpu.memory_space<vmem>>, %arg12: memref<2x8x32xf32, #tpu.memory_space<vmem>>) attributes {dimension_semantics = [], scalar_prefetch = 0 : i64, scratch_operands = 0 : i64, tpu.core_type = #tpu.core_type<tc>} {
    %c0 = arith.constant 0 : index
    %c0_0 = arith.constant 0 : index
    %0 = vector.load %arg0[%c0, %c0_0] : memref<64x32xf32, #tpu.memory_space<vmem>>, vector<64x32xf32>
    %c0_1 = arith.constant 0 : index
    %c0_2 = arith.constant 0 : index
    %1 = vector.load %arg3[%c0_1, %c0_2] : memref<32x128xf32, #tpu.memory_space<vmem>>, vector<32x128xf32>
    %cst = arith.constant dense<0.000000e+00> : vector<64x128xf32>
    %2 = tpu.matmul %0, %1, %cst {dimension_numbers = #tpu.dot_dimension_numbers<[1], [0], [0], [1], [0, 0, 1, 1], [], []>} : vector<64x32xf32>, vector<32x128xf32>, vector<64x128xf32> -> vector<64x128xf32>
    %c0_3 = arith.constant 0 : index
    %c0_4 = arith.constant 0 : index
    %3 = vector.load %arg5[%c0_3, %c0_4] : memref<1x128xf32, #tpu.memory_space<vmem>>, vector<1x128xf32>
    %4 = vector.broadcast %3 : vector<1x128xf32> to vector<64x128xf32>
    %5 = arith.addf %2, %4 : vector<64x128xf32>
    %c0_5 = arith.constant 0 : index
    %c0_6 = arith.constant 0 : index
    %6 = vector.load %arg4[%c0_5, %c0_6] : memref<32x128xf32, #tpu.memory_space<vmem>>, vector<32x128xf32>
    %c0_7 = arith.constant 0 : index
    %c0_8 = arith.constant 0 : index
    %7 = vector.load %arg6[%c0_7, %c0_8] : memref<64x128xf32, #tpu.memory_space<vmem>>, vector<64x128xf32>
    %c0_9 = arith.constant 0 : index
    %c0_10 = arith.constant 0 : index
    %8 = vector.load %arg7[%c0_9, %c0_10] : memref<1x128xf32, #tpu.memory_space<vmem>>, vector<1x128xf32>
    %9 = tpu.iota {dimensions = array<i32: 1>} : vector<8x128xi32>
    %c96_i32 = arith.constant 96 : i32
    %10 = vector.broadcast %c96_i32 : i32 to vector<8x128xi32>
    %11 = arith.cmpi slt, %9, %10 : vector<8x128xi32>
    %c0_11 = arith.constant 0 : index
    %c0_12 = arith.constant 0 : index
    %c0_13 = arith.constant 0 : index
    %12 = vector.load %arg1[%c0_11, %c0_12, %c0_13] : memref<2x8x32xf32, #tpu.memory_space<vmem>>, vector<1x8x32xf32>
    %13 = vector.shape_cast %12 : vector<1x8x32xf32> to vector<8x32xf32>
    %c1 = arith.constant 1 : index
    %c0_14 = arith.constant 0 : index
    %c0_15 = arith.constant 0 : index
    %14 = vector.load %arg1[%c1, %c0_14, %c0_15] : memref<2x8x32xf32, #tpu.memory_space<vmem>>, vector<1x8x32xf32>
    %15 = vector.shape_cast %14 : vector<1x8x32xf32> to vector<8x32xf32>
    %c0_16 = arith.constant 0 : index
    %c0_17 = arith.constant 0 : index
    %c0_18 = arith.constant 0 : index
    %16 = vector.load %arg2[%c0_16, %c0_17, %c0_18] : memref<2x8x32xf32, #tpu.memory_space<vmem>>, vector<1x8x32xf32>
    %17 = vector.shape_cast %16 : vector<1x8x32xf32> to vector<8x32xf32>
    %c1_19 = arith.constant 1 : index
    %c0_20 = arith.constant 0 : index
    %c0_21 = arith.constant 0 : index
    %18 = vector.load %arg2[%c1_19, %c0_20, %c0_21] : memref<2x8x32xf32, #tpu.memory_space<vmem>>, vector<1x8x32xf32>
    %19 = vector.shape_cast %18 : vector<1x8x32xf32> to vector<8x32xf32>
    %20 = vector.extract_strided_slice %5 {offsets = [0, 0], sizes = [8, 128], strides = [1, 1]} : vector<64x128xf32> to vector<8x128xf32>
    %cst_22 = arith.constant dense<0.000000e+00> : vector<8x128xf32>
    %21 = tpu.matmul %13, %6, %cst_22 {dimension_numbers = #tpu.dot_dimension_numbers<[1], [0], [0], [1], [0, 0, 1, 1], [], []>} : vector<8x32xf32>, vector<32x128xf32>, vector<8x128xf32> -> vector<8x128xf32>
    %22 = arith.addf %20, %21 : vector<8x128xf32>
    %23 = arith.negf %22 : vector<8x128xf32>
    %24 = math.exp %23 : vector<8x128xf32>
    %cst_23 = arith.constant 1.000000e+00 : f32
    %25 = vector.broadcast %cst_23 : f32 to vector<8x128xf32>
    %26 = arith.addf %25, %24 : vector<8x128xf32>
    %27 = arith.divf %25, %26 : vector<8x128xf32>
    %28 = math.tanh %22 : vector<8x128xf32>
    %29 = arith.select %11, %27, %28 : vector<8x128xi1>, vector<8x128xf32>
    %30 = vector.extract_strided_slice %29 {offsets = [0, 0], sizes = [8, 32], strides = [1, 1]} : vector<8x128xf32> to vector<8x32xf32>
    %c96_i32_24 = arith.constant 96 : i32
    %31 = tpu.dynamic_rotate %29 by %c96_i32_24 dim 1 : vector<8x128xf32>, i32 -> vector<8x128xf32>
    %32 = vector.extract_strided_slice %31 {offsets = [0, 0], sizes = [8, 32], strides = [1, 1]} : vector<8x128xf32> to vector<8x32xf32>
    %c64_i32 = arith.constant 64 : i32
    %33 = tpu.dynamic_rotate %29 by %c64_i32 dim 1 : vector<8x128xf32>, i32 -> vector<8x128xf32>
    %34 = vector.extract_strided_slice %33 {offsets = [0, 0], sizes = [8, 32], strides = [1, 1]} : vector<8x128xf32> to vector<8x32xf32>
    %c32_i32 = arith.constant 32 : i32
    %35 = tpu.dynamic_rotate %29 by %c32_i32 dim 1 : vector<8x128xf32>, i32 -> vector<8x128xf32>
    %36 = vector.extract_strided_slice %35 {offsets = [0, 0], sizes = [8, 32], strides = [1, 1]} : vector<8x128xf32> to vector<8x32xf32>
    %37 = arith.mulf %32, %17 : vector<8x32xf32>
    %38 = arith.mulf %30, %36 : vector<8x32xf32>
    %39 = arith.addf %37, %38 : vector<8x32xf32>
    %40 = math.tanh %39 : vector<8x32xf32>
    %41 = arith.mulf %34, %40 : vector<8x32xf32>
    %42 = tpu.concatenate %41, %15 in 1 : vector<8x32xf32>, vector<8x32xf32> -> vector<8x64xf32>
    %cst_25 = arith.constant dense<0.000000e+00> : vector<8x128xf32>
    %43 = tpu.matmul %42, %7, %cst_25 {dimension_numbers = #tpu.dot_dimension_numbers<[1], [0], [0], [1], [0, 0, 1, 1], [], []>} : vector<8x64xf32>, vector<64x128xf32>, vector<8x128xf32> -> vector<8x128xf32>
    %44 = vector.broadcast %8 : vector<1x128xf32> to vector<8x128xf32>
    %45 = arith.addf %43, %44 : vector<8x128xf32>
    %46 = arith.negf %45 : vector<8x128xf32>
    %47 = math.exp %46 : vector<8x128xf32>
    %cst_26 = arith.constant 1.000000e+00 : f32
    %48 = vector.broadcast %cst_26 : f32 to vector<8x128xf32>
    %49 = arith.addf %48, %47 : vector<8x128xf32>
    %50 = arith.divf %48, %49 : vector<8x128xf32>
    %51 = math.tanh %45 : vector<8x128xf32>
    %52 = arith.select %11, %50, %51 : vector<8x128xi1>, vector<8x128xf32>
    %53 = vector.extract_strided_slice %52 {offsets = [0, 0], sizes = [8, 32], strides = [1, 1]} : vector<8x128xf32> to vector<8x32xf32>
    %c96_i32_27 = arith.constant 96 : i32
    %54 = tpu.dynamic_rotate %52 by %c96_i32_27 dim 1 : vector<8x128xf32>, i32 -> vector<8x128xf32>
    %55 = vector.extract_strided_slice %54 {offsets = [0, 0], sizes = [8, 32], strides = [1, 1]} : vector<8x128xf32> to vector<8x32xf32>
    %c64_i32_28 = arith.constant 64 : i32
    %56 = tpu.dynamic_rotate %52 by %c64_i32_28 dim 1 : vector<8x128xf32>, i32 -> vector<8x128xf32>
    %57 = vector.extract_strided_slice %56 {offsets = [0, 0], sizes = [8, 32], strides = [1, 1]} : vector<8x128xf32> to vector<8x32xf32>
    %c32_i32_29 = arith.constant 32 : i32
    %58 = tpu.dynamic_rotate %52 by %c32_i32_29 dim 1 : vector<8x128xf32>, i32 -> vector<8x128xf32>
    %59 = vector.extract_strided_slice %58 {offsets = [0, 0], sizes = [8, 32], strides = [1, 1]} : vector<8x128xf32> to vector<8x32xf32>
    %60 = arith.mulf %55, %19 : vector<8x32xf32>
    %61 = arith.mulf %53, %59 : vector<8x32xf32>
    %62 = arith.addf %60, %61 : vector<8x32xf32>
    %63 = math.tanh %62 : vector<8x32xf32>
    %64 = arith.mulf %57, %63 : vector<8x32xf32>
    %65 = vector.extract_strided_slice %5 {offsets = [8, 0], sizes = [8, 128], strides = [1, 1]} : vector<64x128xf32> to vector<8x128xf32>
    %cst_30 = arith.constant dense<0.000000e+00> : vector<8x128xf32>
    %66 = tpu.matmul %41, %6, %cst_30 {dimension_numbers = #tpu.dot_dimension_numbers<[1], [0], [0], [1], [0, 0, 1, 1], [], []>} : vector<8x32xf32>, vector<32x128xf32>, vector<8x128xf32> -> vector<8x128xf32>
    %67 = arith.addf %65, %66 : vector<8x128xf32>
    %68 = arith.negf %67 : vector<8x128xf32>
    %69 = math.exp %68 : vector<8x128xf32>
    %cst_31 = arith.constant 1.000000e+00 : f32
    %70 = vector.broadcast %cst_31 : f32 to vector<8x128xf32>
    %71 = arith.addf %70, %69 : vector<8x128xf32>
    %72 = arith.divf %70, %71 : vector<8x128xf32>
    %73 = math.tanh %67 : vector<8x128xf32>
    %74 = arith.select %11, %72, %73 : vector<8x128xi1>, vector<8x128xf32>
    %75 = vector.extract_strided_slice %74 {offsets = [0, 0], sizes = [8, 32], strides = [1, 1]} : vector<8x128xf32> to vector<8x32xf32>
    %c96_i32_32 = arith.constant 96 : i32
    %76 = tpu.dynamic_rotate %74 by %c96_i32_32 dim 1 : vector<8x128xf32>, i32 -> vector<8x128xf32>
    %77 = vector.extract_strided_slice %76 {offsets = [0, 0], sizes = [8, 32], strides = [1, 1]} : vector<8x128xf32> to vector<8x32xf32>
    %c64_i32_33 = arith.constant 64 : i32
    %78 = tpu.dynamic_rotate %74 by %c64_i32_33 dim 1 : vector<8x128xf32>, i32 -> vector<8x128xf32>
    %79 = vector.extract_strided_slice %78 {offsets = [0, 0], sizes = [8, 32], strides = [1, 1]} : vector<8x128xf32> to vector<8x32xf32>
    %c32_i32_34 = arith.constant 32 : i32
    %80 = tpu.dynamic_rotate %74 by %c32_i32_34 dim 1 : vector<8x128xf32>, i32 -> vector<8x128xf32>
    %81 = vector.extract_strided_slice %80 {offsets = [0, 0], sizes = [8, 32], strides = [1, 1]} : vector<8x128xf32> to vector<8x32xf32>
    %82 = arith.mulf %77, %39 : vector<8x32xf32>
    %83 = arith.mulf %75, %81 : vector<8x32xf32>
    %84 = arith.addf %82, %83 : vector<8x32xf32>
    %85 = math.tanh %84 : vector<8x32xf32>
    %86 = arith.mulf %79, %85 : vector<8x32xf32>
    %87 = tpu.concatenate %86, %64 in 1 : vector<8x32xf32>, vector<8x32xf32> -> vector<8x64xf32>
    %cst_35 = arith.constant dense<0.000000e+00> : vector<8x128xf32>
    %88 = tpu.matmul %87, %7, %cst_35 {dimension_numbers = #tpu.dot_dimension_numbers<[1], [0], [0], [1], [0, 0, 1, 1], [], []>} : vector<8x64xf32>, vector<64x128xf32>, vector<8x128xf32> -> vector<8x128xf32>
    %89 = vector.broadcast %8 : vector<1x128xf32> to vector<8x128xf32>
    %90 = arith.addf %88, %89 : vector<8x128xf32>
    %91 = arith.negf %90 : vector<8x128xf32>
    %92 = math.exp %91 : vector<8x128xf32>
    %cst_36 = arith.constant 1.000000e+00 : f32
    %93 = vector.broadcast %cst_36 : f32 to vector<8x128xf32>
    %94 = arith.addf %93, %92 : vector<8x128xf32>
    %95 = arith.divf %93, %94 : vector<8x128xf32>
    %96 = math.tanh %90 : vector<8x128xf32>
    %97 = arith.select %11, %95, %96 : vector<8x128xi1>, vector<8x128xf32>
    %98 = vector.extract_strided_slice %97 {offsets = [0, 0], sizes = [8, 32], strides = [1, 1]} : vector<8x128xf32> to vector<8x32xf32>
    %c96_i32_37 = arith.constant 96 : i32
    %99 = tpu.dynamic_rotate %97 by %c96_i32_37 dim 1 : vector<8x128xf32>, i32 -> vector<8x128xf32>
    %100 = vector.extract_strided_slice %99 {offsets = [0, 0], sizes = [8, 32], strides = [1, 1]} : vector<8x128xf32> to vector<8x32xf32>
    %c64_i32_38 = arith.constant 64 : i32
    %101 = tpu.dynamic_rotate %97 by %c64_i32_38 dim 1 : vector<8x128xf32>, i32 -> vector<8x128xf32>
    %102 = vector.extract_strided_slice %101 {offsets = [0, 0], sizes = [8, 32], strides = [1, 1]} : vector<8x128xf32> to vector<8x32xf32>
    %c32_i32_39 = arith.constant 32 : i32
    %103 = tpu.dynamic_rotate %97 by %c32_i32_39 dim 1 : vector<8x128xf32>, i32 -> vector<8x128xf32>
    %104 = vector.extract_strided_slice %103 {offsets = [0, 0], sizes = [8, 32], strides = [1, 1]} : vector<8x128xf32> to vector<8x32xf32>
    %105 = arith.mulf %100, %62 : vector<8x32xf32>
    %106 = arith.mulf %98, %104 : vector<8x32xf32>
    %107 = arith.addf %105, %106 : vector<8x32xf32>
    %108 = math.tanh %107 : vector<8x32xf32>
    %109 = arith.mulf %102, %108 : vector<8x32xf32>
    %110 = vector.extract_strided_slice %5 {offsets = [16, 0], sizes = [8, 128], strides = [1, 1]} : vector<64x128xf32> to vector<8x128xf32>
    %cst_40 = arith.constant dense<0.000000e+00> : vector<8x128xf32>
    %111 = tpu.matmul %86, %6, %cst_40 {dimension_numbers = #tpu.dot_dimension_numbers<[1], [0], [0], [1], [0, 0, 1, 1], [], []>} : vector<8x32xf32>, vector<32x128xf32>, vector<8x128xf32> -> vector<8x128xf32>
    %112 = arith.addf %110, %111 : vector<8x128xf32>
    %113 = arith.negf %112 : vector<8x128xf32>
    %114 = math.exp %113 : vector<8x128xf32>
    %cst_41 = arith.constant 1.000000e+00 : f32
    %115 = vector.broadcast %cst_41 : f32 to vector<8x128xf32>
    %116 = arith.addf %115, %114 : vector<8x128xf32>
    %117 = arith.divf %115, %116 : vector<8x128xf32>
    %118 = math.tanh %112 : vector<8x128xf32>
    %119 = arith.select %11, %117, %118 : vector<8x128xi1>, vector<8x128xf32>
    %120 = vector.extract_strided_slice %119 {offsets = [0, 0], sizes = [8, 32], strides = [1, 1]} : vector<8x128xf32> to vector<8x32xf32>
    %c96_i32_42 = arith.constant 96 : i32
    %121 = tpu.dynamic_rotate %119 by %c96_i32_42 dim 1 : vector<8x128xf32>, i32 -> vector<8x128xf32>
    %122 = vector.extract_strided_slice %121 {offsets = [0, 0], sizes = [8, 32], strides = [1, 1]} : vector<8x128xf32> to vector<8x32xf32>
    %c64_i32_43 = arith.constant 64 : i32
    %123 = tpu.dynamic_rotate %119 by %c64_i32_43 dim 1 : vector<8x128xf32>, i32 -> vector<8x128xf32>
    %124 = vector.extract_strided_slice %123 {offsets = [0, 0], sizes = [8, 32], strides = [1, 1]} : vector<8x128xf32> to vector<8x32xf32>
    %c32_i32_44 = arith.constant 32 : i32
    %125 = tpu.dynamic_rotate %119 by %c32_i32_44 dim 1 : vector<8x128xf32>, i32 -> vector<8x128xf32>
    %126 = vector.extract_strided_slice %125 {offsets = [0, 0], sizes = [8, 32], strides = [1, 1]} : vector<8x128xf32> to vector<8x32xf32>
    %127 = arith.mulf %122, %84 : vector<8x32xf32>
    %128 = arith.mulf %120, %126 : vector<8x32xf32>
    %129 = arith.addf %127, %128 : vector<8x32xf32>
    %130 = math.tanh %129 : vector<8x32xf32>
    %131 = arith.mulf %124, %130 : vector<8x32xf32>
    %132 = tpu.concatenate %131, %109 in 1 : vector<8x32xf32>, vector<8x32xf32> -> vector<8x64xf32>
    %cst_45 = arith.constant dense<0.000000e+00> : vector<8x128xf32>
    %133 = tpu.matmul %132, %7, %cst_45 {dimension_numbers = #tpu.dot_dimension_numbers<[1], [0], [0], [1], [0, 0, 1, 1], [], []>} : vector<8x64xf32>, vector<64x128xf32>, vector<8x128xf32> -> vector<8x128xf32>
    %134 = vector.broadcast %8 : vector<1x128xf32> to vector<8x128xf32>
    %135 = arith.addf %133, %134 : vector<8x128xf32>
    %136 = arith.negf %135 : vector<8x128xf32>
    %137 = math.exp %136 : vector<8x128xf32>
    %cst_46 = arith.constant 1.000000e+00 : f32
    %138 = vector.broadcast %cst_46 : f32 to vector<8x128xf32>
    %139 = arith.addf %138, %137 : vector<8x128xf32>
    %140 = arith.divf %138, %139 : vector<8x128xf32>
    %141 = math.tanh %135 : vector<8x128xf32>
    %142 = arith.select %11, %140, %141 : vector<8x128xi1>, vector<8x128xf32>
    %143 = vector.extract_strided_slice %142 {offsets = [0, 0], sizes = [8, 32], strides = [1, 1]} : vector<8x128xf32> to vector<8x32xf32>
    %c96_i32_47 = arith.constant 96 : i32
    %144 = tpu.dynamic_rotate %142 by %c96_i32_47 dim 1 : vector<8x128xf32>, i32 -> vector<8x128xf32>
    %145 = vector.extract_strided_slice %144 {offsets = [0, 0], sizes = [8, 32], strides = [1, 1]} : vector<8x128xf32> to vector<8x32xf32>
    %c64_i32_48 = arith.constant 64 : i32
    %146 = tpu.dynamic_rotate %142 by %c64_i32_48 dim 1 : vector<8x128xf32>, i32 -> vector<8x128xf32>
    %147 = vector.extract_strided_slice %146 {offsets = [0, 0], sizes = [8, 32], strides = [1, 1]} : vector<8x128xf32> to vector<8x32xf32>
    %c32_i32_49 = arith.constant 32 : i32
    %148 = tpu.dynamic_rotate %142 by %c32_i32_49 dim 1 : vector<8x128xf32>, i32 -> vector<8x128xf32>
    %149 = vector.extract_strided_slice %148 {offsets = [0, 0], sizes = [8, 32], strides = [1, 1]} : vector<8x128xf32> to vector<8x32xf32>
    %150 = arith.mulf %145, %107 : vector<8x32xf32>
    %151 = arith.mulf %143, %149 : vector<8x32xf32>
    %152 = arith.addf %150, %151 : vector<8x32xf32>
    %153 = math.tanh %152 : vector<8x32xf32>
    %154 = arith.mulf %147, %153 : vector<8x32xf32>
    %155 = vector.extract_strided_slice %5 {offsets = [24, 0], sizes = [8, 128], strides = [1, 1]} : vector<64x128xf32> to vector<8x128xf32>
    %cst_50 = arith.constant dense<0.000000e+00> : vector<8x128xf32>
    %156 = tpu.matmul %131, %6, %cst_50 {dimension_numbers = #tpu.dot_dimension_numbers<[1], [0], [0], [1], [0, 0, 1, 1], [], []>} : vector<8x32xf32>, vector<32x128xf32>, vector<8x128xf32> -> vector<8x128xf32>
    %157 = arith.addf %155, %156 : vector<8x128xf32>
    %158 = arith.negf %157 : vector<8x128xf32>
    %159 = math.exp %158 : vector<8x128xf32>
    %cst_51 = arith.constant 1.000000e+00 : f32
    %160 = vector.broadcast %cst_51 : f32 to vector<8x128xf32>
    %161 = arith.addf %160, %159 : vector<8x128xf32>
    %162 = arith.divf %160, %161 : vector<8x128xf32>
    %163 = math.tanh %157 : vector<8x128xf32>
    %164 = arith.select %11, %162, %163 : vector<8x128xi1>, vector<8x128xf32>
    %165 = vector.extract_strided_slice %164 {offsets = [0, 0], sizes = [8, 32], strides = [1, 1]} : vector<8x128xf32> to vector<8x32xf32>
    %c96_i32_52 = arith.constant 96 : i32
    %166 = tpu.dynamic_rotate %164 by %c96_i32_52 dim 1 : vector<8x128xf32>, i32 -> vector<8x128xf32>
    %167 = vector.extract_strided_slice %166 {offsets = [0, 0], sizes = [8, 32], strides = [1, 1]} : vector<8x128xf32> to vector<8x32xf32>
    %c64_i32_53 = arith.constant 64 : i32
    %168 = tpu.dynamic_rotate %164 by %c64_i32_53 dim 1 : vector<8x128xf32>, i32 -> vector<8x128xf32>
    %169 = vector.extract_strided_slice %168 {offsets = [0, 0], sizes = [8, 32], strides = [1, 1]} : vector<8x128xf32> to vector<8x32xf32>
    %c32_i32_54 = arith.constant 32 : i32
    %170 = tpu.dynamic_rotate %164 by %c32_i32_54 dim 1 : vector<8x128xf32>, i32 -> vector<8x128xf32>
    %171 = vector.extract_strided_slice %170 {offsets = [0, 0], sizes = [8, 32], strides = [1, 1]} : vector<8x128xf32> to vector<8x32xf32>
    %172 = arith.mulf %167, %129 : vector<8x32xf32>
    %173 = arith.mulf %165, %171 : vector<8x32xf32>
    %174 = arith.addf %172, %173 : vector<8x32xf32>
    %175 = math.tanh %174 : vector<8x32xf32>
    %176 = arith.mulf %169, %175 : vector<8x32xf32>
    %177 = tpu.concatenate %176, %154 in 1 : vector<8x32xf32>, vector<8x32xf32> -> vector<8x64xf32>
    %cst_55 = arith.constant dense<0.000000e+00> : vector<8x128xf32>
    %178 = tpu.matmul %177, %7, %cst_55 {dimension_numbers = #tpu.dot_dimension_numbers<[1], [0], [0], [1], [0, 0, 1, 1], [], []>} : vector<8x64xf32>, vector<64x128xf32>, vector<8x128xf32> -> vector<8x128xf32>
    %179 = vector.broadcast %8 : vector<1x128xf32> to vector<8x128xf32>
    %180 = arith.addf %178, %179 : vector<8x128xf32>
    %181 = arith.negf %180 : vector<8x128xf32>
    %182 = math.exp %181 : vector<8x128xf32>
    %cst_56 = arith.constant 1.000000e+00 : f32
    %183 = vector.broadcast %cst_56 : f32 to vector<8x128xf32>
    %184 = arith.addf %183, %182 : vector<8x128xf32>
    %185 = arith.divf %183, %184 : vector<8x128xf32>
    %186 = math.tanh %180 : vector<8x128xf32>
    %187 = arith.select %11, %185, %186 : vector<8x128xi1>, vector<8x128xf32>
    %188 = vector.extract_strided_slice %187 {offsets = [0, 0], sizes = [8, 32], strides = [1, 1]} : vector<8x128xf32> to vector<8x32xf32>
    %c96_i32_57 = arith.constant 96 : i32
    %189 = tpu.dynamic_rotate %187 by %c96_i32_57 dim 1 : vector<8x128xf32>, i32 -> vector<8x128xf32>
    %190 = vector.extract_strided_slice %189 {offsets = [0, 0], sizes = [8, 32], strides = [1, 1]} : vector<8x128xf32> to vector<8x32xf32>
    %c64_i32_58 = arith.constant 64 : i32
    %191 = tpu.dynamic_rotate %187 by %c64_i32_58 dim 1 : vector<8x128xf32>, i32 -> vector<8x128xf32>
    %192 = vector.extract_strided_slice %191 {offsets = [0, 0], sizes = [8, 32], strides = [1, 1]} : vector<8x128xf32> to vector<8x32xf32>
    %c32_i32_59 = arith.constant 32 : i32
    %193 = tpu.dynamic_rotate %187 by %c32_i32_59 dim 1 : vector<8x128xf32>, i32 -> vector<8x128xf32>
    %194 = vector.extract_strided_slice %193 {offsets = [0, 0], sizes = [8, 32], strides = [1, 1]} : vector<8x128xf32> to vector<8x32xf32>
    %195 = arith.mulf %190, %152 : vector<8x32xf32>
    %196 = arith.mulf %188, %194 : vector<8x32xf32>
    %197 = arith.addf %195, %196 : vector<8x32xf32>
    %198 = math.tanh %197 : vector<8x32xf32>
    %199 = arith.mulf %192, %198 : vector<8x32xf32>
    %200 = vector.extract_strided_slice %5 {offsets = [32, 0], sizes = [8, 128], strides = [1, 1]} : vector<64x128xf32> to vector<8x128xf32>
    %cst_60 = arith.constant dense<0.000000e+00> : vector<8x128xf32>
    %201 = tpu.matmul %176, %6, %cst_60 {dimension_numbers = #tpu.dot_dimension_numbers<[1], [0], [0], [1], [0, 0, 1, 1], [], []>} : vector<8x32xf32>, vector<32x128xf32>, vector<8x128xf32> -> vector<8x128xf32>
    %202 = arith.addf %200, %201 : vector<8x128xf32>
    %203 = arith.negf %202 : vector<8x128xf32>
    %204 = math.exp %203 : vector<8x128xf32>
    %cst_61 = arith.constant 1.000000e+00 : f32
    %205 = vector.broadcast %cst_61 : f32 to vector<8x128xf32>
    %206 = arith.addf %205, %204 : vector<8x128xf32>
    %207 = arith.divf %205, %206 : vector<8x128xf32>
    %208 = math.tanh %202 : vector<8x128xf32>
    %209 = arith.select %11, %207, %208 : vector<8x128xi1>, vector<8x128xf32>
    %210 = vector.extract_strided_slice %209 {offsets = [0, 0], sizes = [8, 32], strides = [1, 1]} : vector<8x128xf32> to vector<8x32xf32>
    %c96_i32_62 = arith.constant 96 : i32
    %211 = tpu.dynamic_rotate %209 by %c96_i32_62 dim 1 : vector<8x128xf32>, i32 -> vector<8x128xf32>
    %212 = vector.extract_strided_slice %211 {offsets = [0, 0], sizes = [8, 32], strides = [1, 1]} : vector<8x128xf32> to vector<8x32xf32>
    %c64_i32_63 = arith.constant 64 : i32
    %213 = tpu.dynamic_rotate %209 by %c64_i32_63 dim 1 : vector<8x128xf32>, i32 -> vector<8x128xf32>
    %214 = vector.extract_strided_slice %213 {offsets = [0, 0], sizes = [8, 32], strides = [1, 1]} : vector<8x128xf32> to vector<8x32xf32>
    %c32_i32_64 = arith.constant 32 : i32
    %215 = tpu.dynamic_rotate %209 by %c32_i32_64 dim 1 : vector<8x128xf32>, i32 -> vector<8x128xf32>
    %216 = vector.extract_strided_slice %215 {offsets = [0, 0], sizes = [8, 32], strides = [1, 1]} : vector<8x128xf32> to vector<8x32xf32>
    %217 = arith.mulf %212, %174 : vector<8x32xf32>
    %218 = arith.mulf %210, %216 : vector<8x32xf32>
    %219 = arith.addf %217, %218 : vector<8x32xf32>
    %220 = math.tanh %219 : vector<8x32xf32>
    %221 = arith.mulf %214, %220 : vector<8x32xf32>
    %222 = tpu.concatenate %221, %199 in 1 : vector<8x32xf32>, vector<8x32xf32> -> vector<8x64xf32>
    %cst_65 = arith.constant dense<0.000000e+00> : vector<8x128xf32>
    %223 = tpu.matmul %222, %7, %cst_65 {dimension_numbers = #tpu.dot_dimension_numbers<[1], [0], [0], [1], [0, 0, 1, 1], [], []>} : vector<8x64xf32>, vector<64x128xf32>, vector<8x128xf32> -> vector<8x128xf32>
    %224 = vector.broadcast %8 : vector<1x128xf32> to vector<8x128xf32>
    %225 = arith.addf %223, %224 : vector<8x128xf32>
    %226 = arith.negf %225 : vector<8x128xf32>
    %227 = math.exp %226 : vector<8x128xf32>
    %cst_66 = arith.constant 1.000000e+00 : f32
    %228 = vector.broadcast %cst_66 : f32 to vector<8x128xf32>
    %229 = arith.addf %228, %227 : vector<8x128xf32>
    %230 = arith.divf %228, %229 : vector<8x128xf32>
    %231 = math.tanh %225 : vector<8x128xf32>
    %232 = arith.select %11, %230, %231 : vector<8x128xi1>, vector<8x128xf32>
    %233 = vector.extract_strided_slice %232 {offsets = [0, 0], sizes = [8, 32], strides = [1, 1]} : vector<8x128xf32> to vector<8x32xf32>
    %c96_i32_67 = arith.constant 96 : i32
    %234 = tpu.dynamic_rotate %232 by %c96_i32_67 dim 1 : vector<8x128xf32>, i32 -> vector<8x128xf32>
    %235 = vector.extract_strided_slice %234 {offsets = [0, 0], sizes = [8, 32], strides = [1, 1]} : vector<8x128xf32> to vector<8x32xf32>
    %c64_i32_68 = arith.constant 64 : i32
    %236 = tpu.dynamic_rotate %232 by %c64_i32_68 dim 1 : vector<8x128xf32>, i32 -> vector<8x128xf32>
    %237 = vector.extract_strided_slice %236 {offsets = [0, 0], sizes = [8, 32], strides = [1, 1]} : vector<8x128xf32> to vector<8x32xf32>
    %c32_i32_69 = arith.constant 32 : i32
    %238 = tpu.dynamic_rotate %232 by %c32_i32_69 dim 1 : vector<8x128xf32>, i32 -> vector<8x128xf32>
    %239 = vector.extract_strided_slice %238 {offsets = [0, 0], sizes = [8, 32], strides = [1, 1]} : vector<8x128xf32> to vector<8x32xf32>
    %240 = arith.mulf %235, %197 : vector<8x32xf32>
    %241 = arith.mulf %233, %239 : vector<8x32xf32>
    %242 = arith.addf %240, %241 : vector<8x32xf32>
    %243 = math.tanh %242 : vector<8x32xf32>
    %244 = arith.mulf %237, %243 : vector<8x32xf32>
    %245 = vector.extract_strided_slice %5 {offsets = [40, 0], sizes = [8, 128], strides = [1, 1]} : vector<64x128xf32> to vector<8x128xf32>
    %cst_70 = arith.constant dense<0.000000e+00> : vector<8x128xf32>
    %246 = tpu.matmul %221, %6, %cst_70 {dimension_numbers = #tpu.dot_dimension_numbers<[1], [0], [0], [1], [0, 0, 1, 1], [], []>} : vector<8x32xf32>, vector<32x128xf32>, vector<8x128xf32> -> vector<8x128xf32>
    %247 = arith.addf %245, %246 : vector<8x128xf32>
    %248 = arith.negf %247 : vector<8x128xf32>
    %249 = math.exp %248 : vector<8x128xf32>
    %cst_71 = arith.constant 1.000000e+00 : f32
    %250 = vector.broadcast %cst_71 : f32 to vector<8x128xf32>
    %251 = arith.addf %250, %249 : vector<8x128xf32>
    %252 = arith.divf %250, %251 : vector<8x128xf32>
    %253 = math.tanh %247 : vector<8x128xf32>
    %254 = arith.select %11, %252, %253 : vector<8x128xi1>, vector<8x128xf32>
    %255 = vector.extract_strided_slice %254 {offsets = [0, 0], sizes = [8, 32], strides = [1, 1]} : vector<8x128xf32> to vector<8x32xf32>
    %c96_i32_72 = arith.constant 96 : i32
    %256 = tpu.dynamic_rotate %254 by %c96_i32_72 dim 1 : vector<8x128xf32>, i32 -> vector<8x128xf32>
    %257 = vector.extract_strided_slice %256 {offsets = [0, 0], sizes = [8, 32], strides = [1, 1]} : vector<8x128xf32> to vector<8x32xf32>
    %c64_i32_73 = arith.constant 64 : i32
    %258 = tpu.dynamic_rotate %254 by %c64_i32_73 dim 1 : vector<8x128xf32>, i32 -> vector<8x128xf32>
    %259 = vector.extract_strided_slice %258 {offsets = [0, 0], sizes = [8, 32], strides = [1, 1]} : vector<8x128xf32> to vector<8x32xf32>
    %c32_i32_74 = arith.constant 32 : i32
    %260 = tpu.dynamic_rotate %254 by %c32_i32_74 dim 1 : vector<8x128xf32>, i32 -> vector<8x128xf32>
    %261 = vector.extract_strided_slice %260 {offsets = [0, 0], sizes = [8, 32], strides = [1, 1]} : vector<8x128xf32> to vector<8x32xf32>
    %262 = arith.mulf %257, %219 : vector<8x32xf32>
    %263 = arith.mulf %255, %261 : vector<8x32xf32>
    %264 = arith.addf %262, %263 : vector<8x32xf32>
    %265 = math.tanh %264 : vector<8x32xf32>
    %266 = arith.mulf %259, %265 : vector<8x32xf32>
    %267 = tpu.concatenate %266, %244 in 1 : vector<8x32xf32>, vector<8x32xf32> -> vector<8x64xf32>
    %cst_75 = arith.constant dense<0.000000e+00> : vector<8x128xf32>
    %268 = tpu.matmul %267, %7, %cst_75 {dimension_numbers = #tpu.dot_dimension_numbers<[1], [0], [0], [1], [0, 0, 1, 1], [], []>} : vector<8x64xf32>, vector<64x128xf32>, vector<8x128xf32> -> vector<8x128xf32>
    %269 = vector.broadcast %8 : vector<1x128xf32> to vector<8x128xf32>
    %270 = arith.addf %268, %269 : vector<8x128xf32>
    %271 = arith.negf %270 : vector<8x128xf32>
    %272 = math.exp %271 : vector<8x128xf32>
    %cst_76 = arith.constant 1.000000e+00 : f32
    %273 = vector.broadcast %cst_76 : f32 to vector<8x128xf32>
    %274 = arith.addf %273, %272 : vector<8x128xf32>
    %275 = arith.divf %273, %274 : vector<8x128xf32>
    %276 = math.tanh %270 : vector<8x128xf32>
    %277 = arith.select %11, %275, %276 : vector<8x128xi1>, vector<8x128xf32>
    %278 = vector.extract_strided_slice %277 {offsets = [0, 0], sizes = [8, 32], strides = [1, 1]} : vector<8x128xf32> to vector<8x32xf32>
    %c96_i32_77 = arith.constant 96 : i32
    %279 = tpu.dynamic_rotate %277 by %c96_i32_77 dim 1 : vector<8x128xf32>, i32 -> vector<8x128xf32>
    %280 = vector.extract_strided_slice %279 {offsets = [0, 0], sizes = [8, 32], strides = [1, 1]} : vector<8x128xf32> to vector<8x32xf32>
    %c64_i32_78 = arith.constant 64 : i32
    %281 = tpu.dynamic_rotate %277 by %c64_i32_78 dim 1 : vector<8x128xf32>, i32 -> vector<8x128xf32>
    %282 = vector.extract_strided_slice %281 {offsets = [0, 0], sizes = [8, 32], strides = [1, 1]} : vector<8x128xf32> to vector<8x32xf32>
    %c32_i32_79 = arith.constant 32 : i32
    %283 = tpu.dynamic_rotate %277 by %c32_i32_79 dim 1 : vector<8x128xf32>, i32 -> vector<8x128xf32>
    %284 = vector.extract_strided_slice %283 {offsets = [0, 0], sizes = [8, 32], strides = [1, 1]} : vector<8x128xf32> to vector<8x32xf32>
    %285 = arith.mulf %280, %242 : vector<8x32xf32>
    %286 = arith.mulf %278, %284 : vector<8x32xf32>
    %287 = arith.addf %285, %286 : vector<8x32xf32>
    %288 = math.tanh %287 : vector<8x32xf32>
    %289 = arith.mulf %282, %288 : vector<8x32xf32>
    %290 = vector.extract_strided_slice %5 {offsets = [48, 0], sizes = [8, 128], strides = [1, 1]} : vector<64x128xf32> to vector<8x128xf32>
    %cst_80 = arith.constant dense<0.000000e+00> : vector<8x128xf32>
    %291 = tpu.matmul %266, %6, %cst_80 {dimension_numbers = #tpu.dot_dimension_numbers<[1], [0], [0], [1], [0, 0, 1, 1], [], []>} : vector<8x32xf32>, vector<32x128xf32>, vector<8x128xf32> -> vector<8x128xf32>
    %292 = arith.addf %290, %291 : vector<8x128xf32>
    %293 = arith.negf %292 : vector<8x128xf32>
    %294 = math.exp %293 : vector<8x128xf32>
    %cst_81 = arith.constant 1.000000e+00 : f32
    %295 = vector.broadcast %cst_81 : f32 to vector<8x128xf32>
    %296 = arith.addf %295, %294 : vector<8x128xf32>
    %297 = arith.divf %295, %296 : vector<8x128xf32>
    %298 = math.tanh %292 : vector<8x128xf32>
    %299 = arith.select %11, %297, %298 : vector<8x128xi1>, vector<8x128xf32>
    %300 = vector.extract_strided_slice %299 {offsets = [0, 0], sizes = [8, 32], strides = [1, 1]} : vector<8x128xf32> to vector<8x32xf32>
    %c96_i32_82 = arith.constant 96 : i32
    %301 = tpu.dynamic_rotate %299 by %c96_i32_82 dim 1 : vector<8x128xf32>, i32 -> vector<8x128xf32>
    %302 = vector.extract_strided_slice %301 {offsets = [0, 0], sizes = [8, 32], strides = [1, 1]} : vector<8x128xf32> to vector<8x32xf32>
    %c64_i32_83 = arith.constant 64 : i32
    %303 = tpu.dynamic_rotate %299 by %c64_i32_83 dim 1 : vector<8x128xf32>, i32 -> vector<8x128xf32>
    %304 = vector.extract_strided_slice %303 {offsets = [0, 0], sizes = [8, 32], strides = [1, 1]} : vector<8x128xf32> to vector<8x32xf32>
    %c32_i32_84 = arith.constant 32 : i32
    %305 = tpu.dynamic_rotate %299 by %c32_i32_84 dim 1 : vector<8x128xf32>, i32 -> vector<8x128xf32>
    %306 = vector.extract_strided_slice %305 {offsets = [0, 0], sizes = [8, 32], strides = [1, 1]} : vector<8x128xf32> to vector<8x32xf32>
    %307 = arith.mulf %302, %264 : vector<8x32xf32>
    %308 = arith.mulf %300, %306 : vector<8x32xf32>
    %309 = arith.addf %307, %308 : vector<8x32xf32>
    %310 = math.tanh %309 : vector<8x32xf32>
    %311 = arith.mulf %304, %310 : vector<8x32xf32>
    %312 = tpu.concatenate %311, %289 in 1 : vector<8x32xf32>, vector<8x32xf32> -> vector<8x64xf32>
    %cst_85 = arith.constant dense<0.000000e+00> : vector<8x128xf32>
    %313 = tpu.matmul %312, %7, %cst_85 {dimension_numbers = #tpu.dot_dimension_numbers<[1], [0], [0], [1], [0, 0, 1, 1], [], []>} : vector<8x64xf32>, vector<64x128xf32>, vector<8x128xf32> -> vector<8x128xf32>
    %314 = vector.broadcast %8 : vector<1x128xf32> to vector<8x128xf32>
    %315 = arith.addf %313, %314 : vector<8x128xf32>
    %316 = arith.negf %315 : vector<8x128xf32>
    %317 = math.exp %316 : vector<8x128xf32>
    %cst_86 = arith.constant 1.000000e+00 : f32
    %318 = vector.broadcast %cst_86 : f32 to vector<8x128xf32>
    %319 = arith.addf %318, %317 : vector<8x128xf32>
    %320 = arith.divf %318, %319 : vector<8x128xf32>
    %321 = math.tanh %315 : vector<8x128xf32>
    %322 = arith.select %11, %320, %321 : vector<8x128xi1>, vector<8x128xf32>
    %323 = vector.extract_strided_slice %322 {offsets = [0, 0], sizes = [8, 32], strides = [1, 1]} : vector<8x128xf32> to vector<8x32xf32>
    %c96_i32_87 = arith.constant 96 : i32
    %324 = tpu.dynamic_rotate %322 by %c96_i32_87 dim 1 : vector<8x128xf32>, i32 -> vector<8x128xf32>
    %325 = vector.extract_strided_slice %324 {offsets = [0, 0], sizes = [8, 32], strides = [1, 1]} : vector<8x128xf32> to vector<8x32xf32>
    %c64_i32_88 = arith.constant 64 : i32
    %326 = tpu.dynamic_rotate %322 by %c64_i32_88 dim 1 : vector<8x128xf32>, i32 -> vector<8x128xf32>
    %327 = vector.extract_strided_slice %326 {offsets = [0, 0], sizes = [8, 32], strides = [1, 1]} : vector<8x128xf32> to vector<8x32xf32>
    %c32_i32_89 = arith.constant 32 : i32
    %328 = tpu.dynamic_rotate %322 by %c32_i32_89 dim 1 : vector<8x128xf32>, i32 -> vector<8x128xf32>
    %329 = vector.extract_strided_slice %328 {offsets = [0, 0], sizes = [8, 32], strides = [1, 1]} : vector<8x128xf32> to vector<8x32xf32>
    %330 = arith.mulf %325, %287 : vector<8x32xf32>
    %331 = arith.mulf %323, %329 : vector<8x32xf32>
    %332 = arith.addf %330, %331 : vector<8x32xf32>
    %333 = math.tanh %332 : vector<8x32xf32>
    %334 = arith.mulf %327, %333 : vector<8x32xf32>
    %335 = vector.extract_strided_slice %5 {offsets = [56, 0], sizes = [8, 128], strides = [1, 1]} : vector<64x128xf32> to vector<8x128xf32>
    %cst_90 = arith.constant dense<0.000000e+00> : vector<8x128xf32>
    %336 = tpu.matmul %311, %6, %cst_90 {dimension_numbers = #tpu.dot_dimension_numbers<[1], [0], [0], [1], [0, 0, 1, 1], [], []>} : vector<8x32xf32>, vector<32x128xf32>, vector<8x128xf32> -> vector<8x128xf32>
    %337 = arith.addf %335, %336 : vector<8x128xf32>
    %338 = arith.negf %337 : vector<8x128xf32>
    %339 = math.exp %338 : vector<8x128xf32>
    %cst_91 = arith.constant 1.000000e+00 : f32
    %340 = vector.broadcast %cst_91 : f32 to vector<8x128xf32>
    %341 = arith.addf %340, %339 : vector<8x128xf32>
    %342 = arith.divf %340, %341 : vector<8x128xf32>
    %343 = math.tanh %337 : vector<8x128xf32>
    %344 = arith.select %11, %342, %343 : vector<8x128xi1>, vector<8x128xf32>
    %345 = vector.extract_strided_slice %344 {offsets = [0, 0], sizes = [8, 32], strides = [1, 1]} : vector<8x128xf32> to vector<8x32xf32>
    %c96_i32_92 = arith.constant 96 : i32
    %346 = tpu.dynamic_rotate %344 by %c96_i32_92 dim 1 : vector<8x128xf32>, i32 -> vector<8x128xf32>
    %347 = vector.extract_strided_slice %346 {offsets = [0, 0], sizes = [8, 32], strides = [1, 1]} : vector<8x128xf32> to vector<8x32xf32>
    %c64_i32_93 = arith.constant 64 : i32
    %348 = tpu.dynamic_rotate %344 by %c64_i32_93 dim 1 : vector<8x128xf32>, i32 -> vector<8x128xf32>
    %349 = vector.extract_strided_slice %348 {offsets = [0, 0], sizes = [8, 32], strides = [1, 1]} : vector<8x128xf32> to vector<8x32xf32>
    %c32_i32_94 = arith.constant 32 : i32
    %350 = tpu.dynamic_rotate %344 by %c32_i32_94 dim 1 : vector<8x128xf32>, i32 -> vector<8x128xf32>
    %351 = vector.extract_strided_slice %350 {offsets = [0, 0], sizes = [8, 32], strides = [1, 1]} : vector<8x128xf32> to vector<8x32xf32>
    %352 = arith.mulf %347, %309 : vector<8x32xf32>
    %353 = arith.mulf %345, %351 : vector<8x32xf32>
    %354 = arith.addf %352, %353 : vector<8x32xf32>
    %355 = math.tanh %354 : vector<8x32xf32>
    %356 = arith.mulf %349, %355 : vector<8x32xf32>
    %357 = tpu.concatenate %356, %334 in 1 : vector<8x32xf32>, vector<8x32xf32> -> vector<8x64xf32>
    %cst_95 = arith.constant dense<0.000000e+00> : vector<8x128xf32>
    %358 = tpu.matmul %357, %7, %cst_95 {dimension_numbers = #tpu.dot_dimension_numbers<[1], [0], [0], [1], [0, 0, 1, 1], [], []>} : vector<8x64xf32>, vector<64x128xf32>, vector<8x128xf32> -> vector<8x128xf32>
    %359 = vector.broadcast %8 : vector<1x128xf32> to vector<8x128xf32>
    %360 = arith.addf %358, %359 : vector<8x128xf32>
    %361 = arith.negf %360 : vector<8x128xf32>
    %362 = math.exp %361 : vector<8x128xf32>
    %cst_96 = arith.constant 1.000000e+00 : f32
    %363 = vector.broadcast %cst_96 : f32 to vector<8x128xf32>
    %364 = arith.addf %363, %362 : vector<8x128xf32>
    %365 = arith.divf %363, %364 : vector<8x128xf32>
    %366 = math.tanh %360 : vector<8x128xf32>
    %367 = arith.select %11, %365, %366 : vector<8x128xi1>, vector<8x128xf32>
    %368 = vector.extract_strided_slice %367 {offsets = [0, 0], sizes = [8, 32], strides = [1, 1]} : vector<8x128xf32> to vector<8x32xf32>
    %c96_i32_97 = arith.constant 96 : i32
    %369 = tpu.dynamic_rotate %367 by %c96_i32_97 dim 1 : vector<8x128xf32>, i32 -> vector<8x128xf32>
    %370 = vector.extract_strided_slice %369 {offsets = [0, 0], sizes = [8, 32], strides = [1, 1]} : vector<8x128xf32> to vector<8x32xf32>
    %c64_i32_98 = arith.constant 64 : i32
    %371 = tpu.dynamic_rotate %367 by %c64_i32_98 dim 1 : vector<8x128xf32>, i32 -> vector<8x128xf32>
    %372 = vector.extract_strided_slice %371 {offsets = [0, 0], sizes = [8, 32], strides = [1, 1]} : vector<8x128xf32> to vector<8x32xf32>
    %c32_i32_99 = arith.constant 32 : i32
    %373 = tpu.dynamic_rotate %367 by %c32_i32_99 dim 1 : vector<8x128xf32>, i32 -> vector<8x128xf32>
    %374 = vector.extract_strided_slice %373 {offsets = [0, 0], sizes = [8, 32], strides = [1, 1]} : vector<8x128xf32> to vector<8x32xf32>
    %375 = arith.mulf %370, %332 : vector<8x32xf32>
    %376 = arith.mulf %368, %374 : vector<8x32xf32>
    %377 = arith.addf %375, %376 : vector<8x32xf32>
    %378 = math.tanh %377 : vector<8x32xf32>
    %379 = arith.mulf %372, %378 : vector<8x32xf32>
    %c0_100 = arith.constant 0 : index
    %c0_101 = arith.constant 0 : index
    %c0_102 = arith.constant 0 : index
    %380 = vector.load %arg11[%c0_100, %c0_101, %c0_102] : memref<2x8x32xf32, #tpu.memory_space<vmem>>, vector<1x8x32xf32>
    %381 = vector.shape_cast %380 : vector<1x8x32xf32> to vector<8x32xf32>
    %382 = vector.shape_cast %356 : vector<8x32xf32> to vector<1x8x32xf32>
    tpu.vector_store %arg11[%c0_100, %c0_101, %c0_102], %382 {strides = array<i32>} : memref<2x8x32xf32, #tpu.memory_space<vmem>>, vector<1x8x32xf32>,
    %c0_103 = arith.constant 0 : index
    %c0_104 = arith.constant 0 : index
    %c0_105 = arith.constant 0 : index
    %383 = vector.load %arg12[%c0_103, %c0_104, %c0_105] : memref<2x8x32xf32, #tpu.memory_space<vmem>>, vector<1x8x32xf32>
    %384 = vector.shape_cast %383 : vector<1x8x32xf32> to vector<8x32xf32>
    %385 = vector.shape_cast %354 : vector<8x32xf32> to vector<1x8x32xf32>
    tpu.vector_store %arg12[%c0_103, %c0_104, %c0_105], %385 {strides = array<i32>} : memref<2x8x32xf32, #tpu.memory_space<vmem>>, vector<1x8x32xf32>,
    %c1_106 = arith.constant 1 : index
    %c0_107 = arith.constant 0 : index
    %c0_108 = arith.constant 0 : index
    %386 = vector.load %arg11[%c1_106, %c0_107, %c0_108] : memref<2x8x32xf32, #tpu.memory_space<vmem>>, vector<1x8x32xf32>
    %387 = vector.shape_cast %386 : vector<1x8x32xf32> to vector<8x32xf32>
    %388 = vector.shape_cast %379 : vector<8x32xf32> to vector<1x8x32xf32>
    tpu.vector_store %arg11[%c1_106, %c0_107, %c0_108], %388 {strides = array<i32>} : memref<2x8x32xf32, #tpu.memory_space<vmem>>, vector<1x8x32xf32>,
    %c1_109 = arith.constant 1 : index
    %c0_110 = arith.constant 0 : index
    %c0_111 = arith.constant 0 : index
    %389 = vector.load %arg12[%c1_109, %c0_110, %c0_111] : memref<2x8x32xf32, #tpu.memory_space<vmem>>, vector<1x8x32xf32>
    %390 = vector.shape_cast %389 : vector<1x8x32xf32> to vector<8x32xf32>
    %391 = vector.shape_cast %377 : vector<8x32xf32> to vector<1x8x32xf32>
    tpu.vector_store %arg12[%c1_109, %c0_110, %c0_111], %391 {strides = array<i32>} : memref<2x8x32xf32, #tpu.memory_space<vmem>>, vector<1x8x32xf32>,
    %c0_112 = arith.constant 0 : index
    %c0_113 = arith.constant 0 : index
    %392 = vector.load %arg8[%c0_112, %c0_113] : memref<32x1xf32, #tpu.memory_space<vmem>>, vector<32x1xf32>
    %cst_114 = arith.constant dense<0.000000e+00> : vector<8x1xf32>
    %393 = tpu.matmul %379, %392, %cst_114 {dimension_numbers = #tpu.dot_dimension_numbers<[1], [0], [0], [1], [0, 0, 1, 1], [], []>} : vector<8x32xf32>, vector<32x1xf32>, vector<8x1xf32> -> vector<8x1xf32>
    %c0_115 = arith.constant 0 : index
    %c0_116 = arith.constant 0 : index
    %394 = vector.load %arg9[%c0_115, %c0_116] : memref<1x1xf32, #tpu.memory_space<vmem>>, vector<1x1xf32>
    %395 = vector.broadcast %394 : vector<1x1xf32> to vector<8x1xf32>
    %396 = arith.addf %393, %395 : vector<8x1xf32>
    %397 = arith.negf %396 : vector<8x1xf32>
    %398 = math.exp %397 : vector<8x1xf32>
    %cst_117 = arith.constant 1.000000e+00 : f32
    %399 = vector.broadcast %cst_117 : f32 to vector<8x1xf32>
    %400 = arith.addf %399, %398 : vector<8x1xf32>
    %401 = arith.divf %399, %400 : vector<8x1xf32>
    %c0_118 = arith.constant 0 : index
    %c0_119 = arith.constant 0 : index
    %402 = vector.load %arg10[%c0_118, %c0_119] : memref<8x1xf32, #tpu.memory_space<vmem>>, vector<8x1xf32>
    tpu.vector_store %arg10[%c0_118, %c0_119], %401 {strides = array<i32>} : memref<8x1xf32, #tpu.memory_space<vmem>>, vector<8x1xf32>,
    return
  }
}

</mosaic_0001>

<bundles_post_ra>
// kernel: lstm_forward.1
= control target key start
LH: loop header
LB: loop body
LE: loop exit
PB: predicated region body
PF: predicated region fallthrough
CT: control target
= control target key end

     0   :  { %vm56_vm0 = vcmask 261120   ;;  %v135_v19 = vlaneseq  ;;  %s1336_s23 = smov 64   ;;  %s1337_s24 = smov 96   ;;  %vm208_vm6 = vcmask 523264   ;;  %s1867_s3 = inlined_call_operand.vmem [shape: f32[32,128], index: 3, kind: input, shape index: {}]   ;;  %s1868_s4 = inlined_call_operand.vmem [shape: f32[32,128], index: 4, kind: input, shape index: {}]   ;;  %s1869_s0 = inlined_call_operand.vmem [shape: f32[64,32], index: 0, kind: input, shape index: {}]   ;;  %s1870_s1 = inlined_call_operand.vmem [shape: f32[2,8,32], index: 1, kind: input, shape index: {}]   ;;  %s1871_s5 = inlined_call_operand.vmem [shape: f32[1,128], index: 5, kind: input, shape index: {}]   ;;  %s1872_s6 = inlined_call_operand.vmem [shape: f32[64,128], index: 6, kind: input, shape index: {}]   ;;  %s1873_s2 = inlined_call_operand.vmem [shape: f32[2,8,32], index: 2, kind: input, shape index: {}]   ;;  %s1874_s7 = inlined_call_operand.vmem [shape: f32[1,128], index: 7, kind: input, shape index: {}]   ;;  %s1875_s12 = inlined_call_operand.vmem [shape: f32[2,8,32], index: 12, kind: output, shape index: {2}]   ;;  %s1876_s11 = inlined_call_operand.vmem [shape: f32[2,8,32], index: 11, kind: output, shape index: {1}]   ;;  %s1877_s8 = inlined_call_operand.vmem [shape: f32[32,1], index: 8, kind: input, shape index: {}]   ;;  %s1878_s9 = inlined_call_operand.<no memory space> [shape: f32[1,1], index: 9, kind: input, shape index: {}]   ;;  %s1879_s10 = inlined_call_operand.vmem [shape: f32[8,1], index: 10, kind: output, shape index: {0}]  }
   0x1   :  { %v51_v0 = vld [vmem:[%s1867_s3 + $0x18] sm:$0xff]  ;;  %v50_v1 = vld [vmem:[%s1867_s3 + $0x10] sm:$0xff]  ;;  %v49_v4 = vld [vmem:[%s1867_s3 + $0x8] sm:$0xff]  ;;  %s1338_s27 = smov 32  }
   0x2   :  { %v1413_v2 = vld [vmem:[%s1868_s4 + $0x18] sm:$0xff]  ;;  %93 = vmatpush.msra.mxu0 %v51_v0  ;;  %v1419_v3 = vld [vmem:[%s1868_s4 + $0x10] sm:$0xff]  ;;  %v1427_v5 = vld [vmem:[%s1868_s4 + $0x8] sm:$0xff]  ;;  %1192 = vmatpush.msra.mxu3 %v51_v0  ;;  %v1458_v22 = vand.u32 127, %v135_v19 }
   0x3   :  { %159 = vmatpush.msra.mxu1 %v1413_v2  ;;  %v48_v6 = vld [vmem:[%s1867_s3] sm:$0xff]  ;;  %v1154_v32 = vld [vmem:[%s1870_s1 + $0x8] sm:$0xff]  ;;  %v1478_v33 = vld [vmem:[%s1872_s6 + $0x38] sm:$0xff] }
   0x4   :  { %94 = vmatpush.msra.mxu0 %v50_v1  ;;  %v1436_v7 = vld [vmem:[%s1868_s4] sm:$0xff]  ;;  %1193 = vmatpush.msra.mxu3 %v50_v1  ;;  %vm137_vm3 = vcmp.lt.s32.totalorder %v1458_v22, 96  ;;  %v1486_v34 = vld [vmem:[%s1872_s6 + $0x30] sm:$0xff]  ;;  %v1493_v35 = vld [vmem:[%s1872_s6 + $0x28] sm:$0xff] }
   0x5   :  { %160 = vmatpush.msra.mxu1 %v1419_v3  ;;  %v40_v8 = vld [vmem:[%s1869_s0] sm:$0xff]  ;;  %220 = vmatpush.msra.mxu2 %v1478_v33  ;;  %v47_v36 = vld [vmem:[%s1869_s0 + $0x38] sm:$0xff]  ;;  %v1517_v39 = vld [vmem:[%s1872_s6 + $0x10] sm:$0xff] }
   0x6   :  { %95 = vmatpush.msra.mxu0 %v49_v4  ;;  %v138_v9 = vld [vmem:[%s1870_s1] sm:$0xff]  ;;  %1194 = vmatpush.msra.mxu3 %v49_v4  ;;  %v1509_v38 = vld [vmem:[%s1872_s6 + $0x18] sm:$0xff]  ;;  %v1526_v40 = vld [vmem:[%s1872_s6 + $0x8] sm:$0xff] }
   0x7   :  { %161 = vmatpush.msra.mxu1 %v1427_v5  ;;  %v1455_v10 = vld [vmem:[%s1871_s5] ss:$0 sm:$0xff]  ;;  %221 = vmatpush.msra.mxu2 %v1486_v34  ;;  %v41_v42 = vld [vmem:[%s1869_s0 + $0x8] sm:$0xff] }
   0x8   :  { %96 = vmatpush.msra.mxu0 %v48_v6  ;;  %1195 = vmatpush.msra.mxu3 %v48_v6  ;;  %v1504_v37 = vld [vmem:[%s1872_s6 + $0x20] sm:$0xff]  ;;  %v1083_v22 = vld [vmem:[%s1877_s8 + $0x8] sm:$0xff] }
   0x9   :  { %162 = vmatpush.msra.mxu1 %v1436_v7  ;;  %1146 = vmatmul.msk.f32.vlgmr.msra.gmra.mxu0 %vm56_vm0, %v40_v8  ;;  %v1535_v41 = vld [vmem:[%s1872_s6] sm:$0xff] }
   0xa   :  { %1156 = vmatmul.msk.f32.vlgmr.msra.gmra.mxu1 %vm56_vm0, %v138_v9  ;;  %279 = vmatpush.msrb.mxu3 %v1413_v2  ;;  %v141_v44 = vld [vmem:[%s1873_s2] sm:$0xff] }
   0xb   :  { %336 = vmatpush.msrb.mxu1 %v1478_v33  ;;  %1032 = vmatpush.msrb.mxu0 %v1478_v33  ;;  %v1595_v57 = vld [vmem:[%s1874_s7] ss:$0 sm:$0xff] }
   0xc   :  { %280 = vmatpush.msrb.mxu3 %v1419_v3  ;;  %222 = vmatpush.msra.mxu2 %v1493_v35 }
   0xd   :  { %337 = vmatpush.msrb.mxu1 %v1486_v34  ;;  %1033 = vmatpush.msrb.mxu0 %v1486_v34 }
   0xe   :  { %281 = vmatpush.msrb.mxu3 %v1427_v5  ;;  %223 = vmatpush.msra.mxu2 %v1504_v37 }
   0xf   :  { %338 = vmatpush.msrb.mxu1 %v1493_v35  ;;  %1034 = vmatpush.msrb.mxu0 %v1493_v35 }
  0x10   :  { %282 = vmatpush.msrb.mxu3 %v1436_v7  ;;  %224 = vmatpush.msra.mxu2 %v1509_v38 }
  0x11   :  { %1153 = vmatmul.msk.f32.vlgmr.msra.gmra.mxu3 %vm56_vm0, %v47_v36  ;;  %339 = vmatpush.msrb.mxu1 %v1504_v37 }
  0x12   :  { %395 = vmatpush.msra.mxu3 %v1413_v2  ;;  %1035 = vmatpush.msrb.mxu0 %v1504_v37 }
  0x13   :  { %340 = vmatpush.msrb.mxu1 %v1509_v38  ;;  %225 = vmatpush.msra.mxu2 %v1517_v39 }
  0x14   :  { %396 = vmatpush.msra.mxu3 %v1419_v3  ;;  %1036 = vmatpush.msrb.mxu0 %v1509_v38 }
  0x15   :  { %341 = vmatpush.msrb.mxu1 %v1517_v39  ;;  %226 = vmatpush.msra.mxu2 %v1526_v40 }
  0x16   :  { %397 = vmatpush.msra.mxu3 %v1427_v5  ;;  %1037 = vmatpush.msrb.mxu0 %v1517_v39 }
  0x17   :  { %342 = vmatpush.msrb.mxu1 %v1526_v40  ;;  %227 = vmatpush.msra.mxu2 %v1535_v41 }
  0x18   :  { %398 = vmatpush.msra.mxu3 %v1436_v7  ;;  %1038 = vmatpush.msrb.mxu0 %v1526_v40 }
  0x19   :  { %343 = vmatpush.msrb.mxu1 %v1535_v41  ;;  %452 = vmatpush.msrb.mxu2 %v1478_v33 }
  0x1a   :  { %1147 = vmatmul.msk.f32.gmra.mxu0 %vm56_vm0, %v41_v42 }
  0x1b   :  { %568 = vmatpush.msra.mxu1 %v1478_v33  ;;  %453 = vmatpush.msrb.mxu2 %v1486_v34 }
  0x1c   :  { %1039 = vmatpush.msrb.mxu0 %v1535_v41 }
  0x1d   :  { %569 = vmatpush.msra.mxu1 %v1486_v34  ;;  %454 = vmatpush.msrb.mxu2 %v1493_v35 }
  0x1f   :  { %570 = vmatpush.msra.mxu1 %v1493_v35  ;;  %455 = vmatpush.msrb.mxu2 %v1504_v37 }
  0x21   :  { %571 = vmatpush.msra.mxu1 %v1504_v37  ;;  %456 = vmatpush.msrb.mxu2 %v1509_v38 }
  0x23   :  { %572 = vmatpush.msra.mxu1 %v1509_v38  ;;  %457 = vmatpush.msrb.mxu2 %v1517_v39 }
  0x25   :  { %573 = vmatpush.msra.mxu1 %v1517_v39  ;;  %458 = vmatpush.msrb.mxu2 %v1526_v40 }
  0x27   :  { %574 = vmatpush.msra.mxu1 %v1526_v40  ;;  %459 = vmatpush.msrb.mxu2 %v1535_v41 }
  0x29   :  { %575 = vmatpush.msra.mxu1 %v1535_v41 }
  0x86   :  { %v98_v11 = vpop.f32.mrf.mxu0 }
  0x87   :  { %v164_v12 = vpop.f32.mrf.mxu1  ;;  %v99_v13 = vadd.f32 %v1455_v10, %v98_v11 }
  0x89   :  { %v167_v14 = vadd.f32 %v164_v12, %v99_v13 }
  0x8b   :  { %v1157_v15 = vmul.f32 -1.442695, %v167_v14 }
  0x8d   :  { %1202 = vpow2.f32 %v1157_v15 }
  0x93   :  { %v1203_v16 = vpop.eup %1202 }
  0x94   :  { %v171_v17 = vadd.f32 1.0, %v1203_v16  ;;  %v1589_v54 = vpop.f32.mrf.mxu3 }
  0x96   :  { %1204 = vrcp.f32 %v171_v17  ;;  %v183_v23 = vand.u32 2147483648, %v171_v17  ;;  %v181_v25 = vand.u32 2147483647, %v171_v17  ;;  %vm177_vm2 = vweird.f32 %v171_v17 }
  0x97   :  { %1206 = vtanh.f32 %v167_v14  ;;  %v101_v55 = vpop.f32.mrf.mxu0 }
  0x98   :  { %v184_v27 = vor.u32 1.1754944e-38, %v183_v23  ;;  %vm182_vm5 = vcmp.eq.f32.partialorder %v181_v25, 8.507059e+37  ;;  %v102_v56 = vadd.f32 %v1455_v10, %v101_v55 }
  0x9c   :  { %v1205_v18 = vpop.eup %1204 }
  0x9d   :  { %v173_v20 = vmul.f32 %v1205_v18, %v171_v17  ;;  %vm178_vm1 = vweird.f32 %v1205_v18  ;;  %v1207_v29 = vpop.eup %1206 }
  0x9e   :  { %vm179_vm4 = vmor %vm177_vm2, %vm178_vm1 }
  0x9f   :  { %v174_v21 = vsub.f32 1.0, %v173_v20 }
  0xa1   :  { %v175_v24 = vmul.f32 %v1205_v18, %v174_v21 }
  0xa3   :  { %v176_v26 = vadd.f32 %v1205_v18, %v175_v24 }
  0xa5   :  { %v180_v28 = vsel %vm179_vm4, %v1205_v18, %v176_v26 }
  0xa6   :  { %v185_v30 = vsel %vm182_vm5, %v184_v27, %v180_v28 }
  0xa7   :  { %v1463_v31 = vsel %vm137_vm3, %v185_v30, %v1207_v29 }
  0xa8   :  { %191 = vrot.lane.b32.xlu1 %v1463_v31, %s1336_s23  ;;  %189 = vrot.lane.b32.xlu0 %v1463_v31, %s1337_s24 }
  0xb0   :  { %193 = vrot.lane.b32.xlu0 %v1463_v31, %s1338_s27  ;;  %201 = vrot.lane.b32.xlu1 %v1154_v32, %s1338_s27 }
 0x11a   :  { %v190_v43 = vpop.permute.xlu0 %189  ;;  %v192_v48 = vpop.permute.xlu1 %191 }
 0x11b   :  { %v195_v46 = vmul.f32 %v190_v43, %v141_v44  ;;  %v42_v43 = vld [vmem:[%s1869_s0 + $0x10] sm:$0xff] }
 0x11c   :  { %1148 = vmatmul.msk.f32.gmra.mxu0 %vm56_vm0, %v42_v43 }
 0x122   :  { %v194_v45 = vpop.permute.xlu0 %193  ;;  %v202_v51 = vpop.permute.xlu1 %201 }
 0x123   :  { %v196_v47 = vmul.f32 %v194_v45, %v1463_v31  ;;  %v1155_v45 = vld [vmem:[%s1873_s2 + $0x8] sm:$0xff] }
 0x125   :  { %v1571_v49 = vadd.f32 %v196_v47, %v195_v46 }
 0x127   :  { %1208 = vtanh.f32 %v1571_v49 }
 0x12d   :  { %v1209_v50 = vpop.eup %1208 }
 0x12e   :  { %v199_v52 = vmul.f32 %v1209_v50, %v192_v48 }
 0x130   :  { %1160 = vmatmul.msk.f32.vlgmr.msrb.gmra.mxu3 %vm56_vm0, %v199_v52  ;;  %v204_v53 = vsel %vm56_vm0, %v199_v52, %v202_v51 }
 0x131   :  { %1158 = vmatmul.msk.f32.vlgmr.msra.gmra.mxu2 %vm208_vm6, %v204_v53  ;;  %511 = vmatpush.msrb.mxu3 %v1413_v2 }
 0x132   :  { %684 = vmatpush.msra.mxu2 %v1478_v33 }
 0x133   :  { %512 = vmatpush.msrb.mxu3 %v1419_v3 }
 0x134   :  { %685 = vmatpush.msra.mxu2 %v1486_v34 }
 0x135   :  { %513 = vmatpush.msrb.mxu3 %v1427_v5 }
 0x136   :  { %686 = vmatpush.msra.mxu2 %v1493_v35 }
 0x137   :  { %514 = vmatpush.msrb.mxu3 %v1436_v7 }
 0x138   :  { %687 = vmatpush.msra.mxu2 %v1504_v37 }
 0x13a   :  { %688 = vmatpush.msra.mxu2 %v1509_v38 }
 0x13c   :  { %689 = vmatpush.msra.mxu2 %v1517_v39 }
 0x13e   :  { %690 = vmatpush.msra.mxu2 %v1526_v40 }
 0x140   :  { %691 = vmatpush.msra.mxu2 %v1535_v41 }
 0x1b3   :  { %v284_v58 = vpop.f32.mrf.mxu3 }
 0x1b4   :  { %v287_v59 = vadd.f32 %v284_v58, %v102_v56  ;;  %v229_v60 = vpop.f32.mrf.mxu2 }
 0x1b5   :  { %v230_v61 = vadd.f32 %v1595_v57, %v229_v60 }
 0x1b6   :  { %v1161_v62 = vmul.f32 -1.442695, %v287_v59 }
 0x1b7   :  { %v1159_v63 = vmul.f32 -1.442695, %v230_v61 }
 0x1b8   :  { %1210 = vpow2.f32 %v1161_v62 }
 0x1b9   :  { %1212 = vpow2.f32 %v1159_v63 }
 0x1be   :  { %v1211_v0 = vpop.eup %1210 }
 0x1bf   :  { %v1213_v1 = vpop.eup %1212  ;;  %v291_v4 = vadd.f32 1.0, %v1211_v0  ;;  %v104_v0 = vpop.f32.mrf.mxu0 }
 0x1c0   :  { %v235_v6 = vadd.f32 1.0, %v1213_v1  ;;  %v105_v1 = vadd.f32 %v1455_v10, %v104_v0 }
 0x1c1   :  { %1214 = vrcp.f32 %v291_v4  ;;  %v303_v14 = vand.u32 2147483648, %v291_v4  ;;  %v301_v17 = vand.u32 2147483647, %v291_v4  ;;  %vm297_vm9 = vweird.f32 %v291_v4 }
 0x1c2   :  { %1216 = vrcp.f32 %v235_v6  ;;  %v247_v18 = vand.u32 2147483648, %v235_v6  ;;  %v245_v20 = vand.u32 2147483647, %v235_v6  ;;  %vm241_vm11 = vweird.f32 %v235_v6 }
 0x1c3   :  { %1218 = vtanh.f32 %v287_v59  ;;  %v304_v23 = vor.u32 1.1754944e-38, %v303_v14  ;;  %vm302_vm12 = vcmp.eq.f32.partialorder %v301_v17, 8.507059e+37 }
 0x1c4   :  { %1220 = vtanh.f32 %v230_v61  ;;  %v248_v27 = vor.u32 1.1754944e-38, %v247_v18  ;;  %vm246_vm14 = vcmp.eq.f32.partialorder %v245_v20, 8.507059e+37 }
 0x1c7   :  { %v1215_v8 = vpop.eup %1214 }
 0x1c8   :  { %v1217_v9 = vpop.eup %1216  ;;  %v293_v11 = vmul.f32 %v1215_v8, %v291_v4  ;;  %vm298_vm7 = vweird.f32 %v1215_v8 }
 0x1c9   :  { %v237_v12 = vmul.f32 %v1217_v9, %v235_v6  ;;  %vm242_vm8 = vweird.f32 %v1217_v9  ;;  %vm299_vm10 = vmor %vm297_vm9, %vm298_vm7  ;;  %v1219_v25 = vpop.eup %1218 }
 0x1ca   :  { %v294_v13 = vsub.f32 1.0, %v293_v11  ;;  %vm243_vm13 = vmor %vm241_vm11, %vm242_vm8  ;;  %v1221_v28 = vpop.eup %1220 }
 0x1cb   :  { %v238_v15 = vsub.f32 1.0, %v237_v12 }
 0x1cc   :  { %v295_v16 = vmul.f32 %v1215_v8, %v294_v13 }
 0x1cd   :  { %v239_v19 = vmul.f32 %v1217_v9, %v238_v15 }
 0x1ce   :  { %v296_v21 = vadd.f32 %v1215_v8, %v295_v16 }
 0x1cf   :  { %v240_v24 = vadd.f32 %v1217_v9, %v239_v19 }
 0x1d0   :  { %v300_v26 = vsel %vm299_vm10, %v1215_v8, %v296_v21 }
 0x1d1   :  { %v305_v29 = vsel %vm302_vm12, %v304_v23, %v300_v26  ;;  %v244_v30 = vsel %vm243_vm13, %v1217_v9, %v240_v24 }
 0x1d2   :  { %v308_v31 = vsel %vm137_vm3, %v305_v29, %v1219_v25  ;;  %v249_v32 = vsel %vm246_vm14, %v248_v27, %v244_v30 }
 0x1d3   :  { %309 = vrot.lane.b32.xlu1 %v308_v31, %s1337_s24  ;;  %v252_v36 = vsel %vm137_vm3, %v249_v32, %v1221_v28 }
 0x1d4   :  { %255 = vrot.lane.b32.xlu0 %v252_v36, %s1336_s23  ;;  %253 = vrot.lane.b32.xlu2 %v252_v36, %s1337_s24 }
 0x1dc   :  { %311 = vrot.lane.b32.xlu0 %v308_v31, %s1336_s23  ;;  %257 = vrot.lane.b32.xlu2 %v252_v36, %s1338_s27 }
 0x1e4   :  { %313 = vrot.lane.b32.xlu2 %v308_v31, %s1338_s27 }
 0x22e   :  { %v254_v42 = vpop.permute.xlu2 %253 }
 0x22f   :  { %v259_v47 = vmul.f32 %v1155_v45, %v254_v42 }
 0x236   :  { %v258_v44 = vpop.permute.xlu2 %257 }
 0x237   :  { %v260_v46 = vmul.f32 %v258_v44, %v252_v36 }
 0x239   :  { %v1615_v48 = vadd.f32 %v260_v46, %v259_v47 }
 0x23b   :  { %1222 = vtanh.f32 %v1615_v48 }
 0x23e   :  { %v314_v50 = vpop.permute.xlu2 %313 }
 0x23f   :  { %v316_v53 = vmul.f32 %v314_v50, %v308_v31 }
 0x241   :  { %v1223_v52 = vpop.eup %1222 }
 0x245   :  { %v310_v51 = vpop.permute.xlu1 %309 }
 0x246   :  { %v315_v55 = vmul.f32 %v310_v51, %v1571_v49  ;;  %v256_v56 = vpop.permute.xlu0 %255 }
 0x247   :  { %v263_v58 = vmul.f32 %v1223_v52, %v256_v56  ;;  %v43_v52 = vld [vmem:[%s1869_s0 + $0x18] sm:$0xff] }
 0x248   :  { %v1619_v59 = vadd.f32 %v316_v53, %v315_v55  ;;  %1149 = vmatmul.msk.f32.gmra.mxu0 %vm56_vm0, %v43_v52 }
 0x249   :  { %321 = vrot.lane.b32.xlu1 %v263_v58, %s1338_s27 }
 0x24a   :  { %1224 = vtanh.f32 %v1619_v59 }
 0x24e   :  { %v312_v61 = vpop.permute.xlu0 %311 }
 0x250   :  { %v1225_v60 = vpop.eup %1224 }
 0x251   :  { %v319_v62 = vmul.f32 %v1225_v60, %v312_v61 }
 0x253   :  { %1164 = vmatmul.msk.f32.vlgmr.msra.gmra.mxu3 %vm56_vm0, %v319_v62 }
 0x254   :  { %627 = vmatpush.msra.mxu3 %v1413_v2 }
 0x256   :  { %628 = vmatpush.msra.mxu3 %v1419_v3 }
 0x258   :  { %629 = vmatpush.msra.mxu3 %v1427_v5 }
 0x25a   :  { %630 = vmatpush.msra.mxu3 %v1436_v7 }
 0x2bb   :  { %v322_v49 = vpop.permute.xlu1 %321 }
 0x2bc   :  { %v324_v63 = vsel %vm56_vm0, %v319_v62, %v322_v49 }
 0x2bd   :  { %1162 = vmatmul.msk.f32.vlgmr.msrb.gmra.mxu1 %vm208_vm6, %v324_v63 }
 0x2be   :  { %800 = vmatpush.msrb.mxu1 %v1478_v33 }
 0x2c0   :  { %801 = vmatpush.msrb.mxu1 %v1486_v34 }
 0x2c2   :  { %802 = vmatpush.msrb.mxu1 %v1493_v35 }
 0x2c4   :  { %803 = vmatpush.msrb.mxu1 %v1504_v37 }
 0x2c6   :  { %804 = vmatpush.msrb.mxu1 %v1509_v38 }
 0x2c8   :  { %805 = vmatpush.msrb.mxu1 %v1517_v39 }
 0x2ca   :  { %806 = vmatpush.msrb.mxu1 %v1526_v40 }
 0x2cc   :  { %807 = vmatpush.msrb.mxu1 %v1535_v41 }
 0x2d6   :  { %v400_v4 = vpop.f32.mrf.mxu3 }
 0x2d7   :  { %v403_v6 = vadd.f32 %v400_v4, %v105_v1 }
 0x2d9   :  { %v1165_v8 = vmul.f32 -1.442695, %v403_v6 }
 0x2db   :  { %1226 = vpow2.f32 %v1165_v8 }
 0x2e1   :  { %v1227_v11 = vpop.eup %1226 }
 0x2e2   :  { %v407_v14 = vadd.f32 1.0, %v1227_v11 }
 0x2e4   :  { %v419_v42 = vand.u32 2147483648, %v407_v14  ;;  %vm413_vm7 = vweird.f32 %v407_v14  ;;  %v417_v44 = vand.u32 2147483647, %v407_v14 }
 0x2e6   :  { %v420_v46 = vor.u32 1.1754944e-38, %v419_v42  ;;  %vm418_vm9 = vcmp.eq.f32.partialorder %v417_v44, 8.507059e+37 }
 0x33a   :  { %v345_v9 = vpop.f32.mrf.mxu1 }
 0x33b   :  { %v346_v12 = vadd.f32 %v1595_v57, %v345_v9 }
 0x33d   :  { %v1163_v13 = vmul.f32 -1.442695, %v346_v12 }
 0x33f   :  { %1228 = vpow2.f32 %v1163_v13 }
 0x340   :  { %1230 = vrcp.f32 %v407_v14 }
 0x345   :  { %v1229_v15 = vpop.eup %1228 }
 0x346   :  { %v351_v16 = vadd.f32 1.0, %v1229_v15  ;;  %v1231_v17 = vpop.eup %1230 }
 0x347   :  { %v409_v18 = vmul.f32 %v1231_v17, %v407_v14  ;;  %vm414_vm5 = vweird.f32 %v1231_v17 }
 0x348   :  { %1232 = vrcp.f32 %v351_v16  ;;  %v363_v24 = vand.u32 2147483648, %v351_v16  ;;  %v361_v26 = vand.u32 2147483647, %v351_v16  ;;  %vm357_vm1 = vweird.f32 %v351_v16  ;;  %vm415_vm8 = vmor %vm413_vm7, %vm414_vm5 }
 0x349   :  { %v410_v21 = vsub.f32 1.0, %v409_v18  ;;  %1234 = vtanh.f32 %v346_v12  ;;  %v107_v12 = vpop.f32.mrf.mxu0 }
 0x34a   :  { %v364_v29 = vor.u32 1.1754944e-38, %v363_v24  ;;  %vm362_vm4 = vcmp.eq.f32.partialorder %v361_v26, 8.507059e+37  ;;  %1236 = vtanh.f32 %v403_v6  ;;  %v108_v13 = vadd.f32 %v1455_v10, %v107_v12 }
 0x34b   :  { %v411_v27 = vmul.f32 %v1231_v17, %v410_v21 }
 0x34d   :  { %v412_v31 = vadd.f32 %v1231_v17, %v411_v27 }
 0x34e   :  { %v1233_v19 = vpop.eup %1232 }
 0x34f   :  { %v353_v20 = vmul.f32 %v1233_v19, %v351_v16  ;;  %vm358_vm15 = vweird.f32 %v1233_v19  ;;  %v1235_v32 = vpop.eup %1234  ;;  %v416_v45 = vsel %vm415_vm8, %v1231_v17, %v412_v31 }
 0x350   :  { %vm359_vm2 = vmor %vm357_vm1, %vm358_vm15  ;;  %v421_v47 = vsel %vm418_vm9, %v420_v46, %v416_v45  ;;  %v1237_v50 = vpop.eup %1236 }
 0x351   :  { %v354_v23 = vsub.f32 1.0, %v353_v20  ;;  %v424_v51 = vsel %vm137_vm3, %v421_v47, %v1237_v50 }
 0x353   :  { %v355_v25 = vmul.f32 %v1233_v19, %v354_v23 }
 0x355   :  { %v356_v28 = vadd.f32 %v1233_v19, %v355_v25 }
 0x357   :  { %v360_v30 = vsel %vm359_vm2, %v1233_v19, %v356_v28 }
 0x358   :  { %v365_v36 = vsel %vm362_vm4, %v364_v29, %v360_v30 }
 0x359   :  { %v368_v43 = vsel %vm137_vm3, %v365_v36, %v1235_v32 }
 0x35a   :  { %371 = vrot.lane.b32.xlu1 %v368_v43, %s1336_s23  ;;  %373 = vrot.lane.b32.xlu0 %v368_v43, %s1338_s27 }
 0x35b   :  { %369 = vrot.lane.b32.xlu2 %v368_v43, %s1337_s24 }
 0x362   :  { %427 = vrot.lane.b32.xlu1 %v424_v51, %s1336_s23  ;;  %429 = vrot.lane.b32.xlu0 %v424_v51, %s1338_s27 }
 0x363   :  { %425 = vrot.lane.b32.xlu2 %v424_v51, %s1337_s24 }
 0x3b5   :  { %v370_v53 = vpop.permute.xlu2 %369 }
 0x3b6   :  { %v375_v56 = vmul.f32 %v370_v53, %v1615_v48 }
 0x3bd   :  { %v426_v61 = vpop.permute.xlu2 %425 }
 0x3be   :  { %v431_v49 = vmul.f32 %v426_v61, %v1619_v59 }
 0x3cc   :  { %v374_v55 = vpop.permute.xlu0 %373  ;;  %v372_v63 = vpop.permute.xlu1 %371 }
 0x3cd   :  { %v376_v58 = vmul.f32 %v374_v55, %v368_v43 }
 0x3cf   :  { %v1655_v60 = vadd.f32 %v376_v58, %v375_v56 }
 0x3d1   :  { %1238 = vtanh.f32 %v1655_v60 }
 0x3d4   :  { %v430_v62 = vpop.permute.xlu0 %429  ;;  %v428_v8 = vpop.permute.xlu1 %427 }
 0x3d5   :  { %v432_v0 = vmul.f32 %v430_v62, %v424_v51  ;;  %v44_v51 = vld [vmem:[%s1869_s0 + $0x20] sm:$0xff] }
 0x3d6   :  { %1150 = vmatmul.msk.f32.gmra.mxu0 %vm56_vm0, %v44_v51 }
 0x3d7   :  { %v1239_v1 = vpop.eup %1238  ;;  %v1659_v4 = vadd.f32 %v432_v0, %v431_v49 }
 0x3d8   :  { %v379_v6 = vmul.f32 %v1239_v1, %v372_v63 }
 0x3d9   :  { %1240 = vtanh.f32 %v1659_v4 }
 0x3da   :  { %437 = vrot.lane.b32.xlu2 %v379_v6, %s1338_s27 }
 0x3df   :  { %v1241_v48 = vpop.eup %1240 }
 0x3e0   :  { %v435_v9 = vmul.f32 %v1241_v48, %v428_v8 }
 0x3e2   :  { %1168 = vmatmul.msk.f32.vlgmr.msrb.gmra.mxu3 %vm56_vm0, %v435_v9 }
 0x3e3   :  { %743 = vmatpush.msrb.mxu3 %v1413_v2 }
 0x3e5   :  { %744 = vmatpush.msrb.mxu3 %v1419_v3 }
 0x3e7   :  { %745 = vmatpush.msrb.mxu3 %v1427_v5 }
 0x3e9   :  { %746 = vmatpush.msrb.mxu3 %v1436_v7 }
 0x434   :  { %v438_v59 = vpop.permute.xlu2 %437 }
 0x435   :  { %v440_v11 = vsel %vm56_vm0, %v435_v9, %v438_v59 }
 0x436   :  { %1166 = vmatmul.msk.f32.vlgmr.msrb.gmra.mxu2 %vm208_vm6, %v440_v11 }
 0x437   :  { %916 = vmatpush.msrb.mxu2 %v1478_v33 }
 0x439   :  { %917 = vmatpush.msrb.mxu2 %v1486_v34 }
 0x43b   :  { %918 = vmatpush.msrb.mxu2 %v1493_v35 }
 0x43d   :  { %919 = vmatpush.msrb.mxu2 %v1504_v37 }
 0x43f   :  { %920 = vmatpush.msrb.mxu2 %v1509_v38 }
 0x441   :  { %921 = vmatpush.msrb.mxu2 %v1517_v39 }
 0x443   :  { %922 = vmatpush.msrb.mxu2 %v1526_v40 }
 0x445   :  { %923 = vmatpush.msrb.mxu2 %v1535_v41 }
 0x453   :  { %v110_v11 = vpop.f32.mrf.mxu0 }
 0x454   :  { %v111_v12 = vadd.f32 %v1455_v10, %v110_v11 }
 0x465   :  { %v516_v14 = vpop.f32.mrf.mxu3 }
 0x466   :  { %v519_v15 = vadd.f32 %v516_v14, %v108_v13 }
 0x468   :  { %v1169_v33 = vmul.f32 -1.442695, %v519_v15 }
 0x46a   :  { %1242 = vpow2.f32 %v1169_v33 }
 0x470   :  { %v1243_v16 = vpop.eup %1242 }
 0x471   :  { %v523_v17 = vadd.f32 1.0, %v1243_v16 }
 0x473   :  { %v535_v36 = vand.u32 2147483648, %v523_v17  ;;  %vm529_vm15 = vweird.f32 %v523_v17  ;;  %v533_v43 = vand.u32 2147483647, %v523_v17 }
 0x475   :  { %v536_v45 = vor.u32 1.1754944e-38, %v535_v36  ;;  %vm534_vm2 = vcmp.eq.f32.partialorder %v533_v43, 8.507059e+37 }
 0x4b9   :  { %v461_v34 = vpop.f32.mrf.mxu2 }
 0x4ba   :  { %v462_v35 = vadd.f32 %v1595_v57, %v461_v34 }
 0x4bc   :  { %v1167_v37 = vmul.f32 -1.442695, %v462_v35 }
 0x4be   :  { %1244 = vpow2.f32 %v1167_v37 }
 0x4bf   :  { %1246 = vrcp.f32 %v523_v17 }
 0x4c4   :  { %v1245_v38 = vpop.eup %1244 }
 0x4c5   :  { %v467_v39 = vadd.f32 1.0, %v1245_v38  ;;  %v1247_v40 = vpop.eup %1246 }
 0x4c6   :  { %v525_v41 = vmul.f32 %v1247_v40, %v523_v17  ;;  %vm530_vm14 = vweird.f32 %v1247_v40 }
 0x4c7   :  { %1248 = vrcp.f32 %v467_v39  ;;  %v479_v23 = vand.u32 2147483648, %v467_v39  ;;  %v477_v25 = vand.u32 2147483647, %v467_v39  ;;  %vm473_vm11 = vweird.f32 %v467_v39  ;;  %vm531_vm1 = vmor %vm529_vm15, %vm530_vm14 }
 0x4c8   :  { %v526_v20 = vsub.f32 1.0, %v525_v41  ;;  %1250 = vtanh.f32 %v462_v35 }
 0x4c9   :  { %v480_v28 = vor.u32 1.1754944e-38, %v479_v23  ;;  %vm478_vm13 = vcmp.eq.f32.partialorder %v477_v25, 8.507059e+37  ;;  %1252 = vtanh.f32 %v519_v15 }
 0x4ca   :  { %v527_v26 = vmul.f32 %v1247_v40, %v526_v20 }
 0x4cc   :  { %v528_v30 = vadd.f32 %v1247_v40, %v527_v26 }
 0x4cd   :  { %v1249_v18 = vpop.eup %1248 }
 0x4ce   :  { %v469_v19 = vmul.f32 %v1249_v18, %v467_v39  ;;  %vm474_vm10 = vweird.f32 %v1249_v18  ;;  %v1251_v31 = vpop.eup %1250  ;;  %v532_v44 = vsel %vm531_vm1, %v1247_v40, %v528_v30 }
 0x4cf   :  { %vm475_vm12 = vmor %vm473_vm11, %vm474_vm10  ;;  %v537_v46 = vsel %vm534_vm2, %v536_v45, %v532_v44  ;;  %v1253_v47 = vpop.eup %1252 }
 0x4d0   :  { %v470_v21 = vsub.f32 1.0, %v469_v19  ;;  %v540_v50 = vsel %vm137_vm3, %v537_v46, %v1253_v47 }
 0x4d2   :  { %v471_v24 = vmul.f32 %v1249_v18, %v470_v21 }
 0x4d4   :  { %v472_v27 = vadd.f32 %v1249_v18, %v471_v24 }
 0x4d6   :  { %v476_v29 = vsel %vm475_vm12, %v1249_v18, %v472_v27 }
 0x4d7   :  { %v481_v32 = vsel %vm478_vm13, %v480_v28, %v476_v29 }
 0x4d8   :  { %v484_v42 = vsel %vm137_vm3, %v481_v32, %v1251_v31 }
 0x4d9   :  { %487 = vrot.lane.b32.xlu2 %v484_v42, %s1336_s23  ;;  %489 = vrot.lane.b32.xlu1 %v484_v42, %s1338_s27 }
 0x4da   :  { %485 = vrot.lane.b32.xlu0 %v484_v42, %s1337_s24 }
 0x4e1   :  { %543 = vrot.lane.b32.xlu2 %v540_v50, %s1336_s23  ;;  %545 = vrot.lane.b32.xlu1 %v540_v50, %s1338_s27 }
 0x4e2   :  { %541 = vrot.lane.b32.xlu0 %v540_v50, %s1337_s24 }
 0x533   :  { %v488_v63 = vpop.permute.xlu2 %487 }
 0x54b   :  { %v490_v52 = vpop.permute.xlu1 %489 }
 0x54c   :  { %v492_v53 = vmul.f32 %v490_v52, %v484_v42  ;;  %v486_v55 = vpop.permute.xlu0 %485 }
 0x54d   :  { %v491_v56 = vmul.f32 %v486_v55, %v1655_v60  ;;  %v544_v60 = vpop.permute.xlu2 %543 }
 0x54f   :  { %v1695_v58 = vadd.f32 %v492_v53, %v491_v56 }
 0x551   :  { %1254 = vtanh.f32 %v1695_v58 }
 0x553   :  { %v546_v61 = vpop.permute.xlu1 %545 }
 0x554   :  { %v548_v62 = vmul.f32 %v546_v61, %v540_v50  ;;  %v542_v49 = vpop.permute.xlu0 %541  ;;  %v45_v50 = vld [vmem:[%s1869_s0 + $0x28] sm:$0xff] }
 0x555   :  { %v547_v0 = vmul.f32 %v542_v49, %v1659_v4  ;;  %1151 = vmatmul.msk.f32.gmra.mxu0 %vm56_vm0, %v45_v50 }
 0x557   :  { %v1255_v1 = vpop.eup %1254  ;;  %v1699_v6 = vadd.f32 %v548_v62, %v547_v0 }
 0x558   :  { %v495_v48 = vmul.f32 %v1255_v1, %v488_v63 }
 0x559   :  { %1256 = vtanh.f32 %v1699_v6 }
 0x55a   :  { %553 = vrot.lane.b32.xlu0 %v495_v48, %s1338_s27 }
 0x55f   :  { %v1257_v8 = vpop.eup %1256 }
 0x560   :  { %v551_v9 = vmul.f32 %v1257_v8, %v544_v60 }
 0x562   :  { %1172 = vmatmul.msk.f32.vlgmr.msra.gmra.mxu3 %vm56_vm0, %v551_v9 }
 0x563   :  { %859 = vmatpush.msra.mxu3 %v1413_v2 }
 0x565   :  { %860 = vmatpush.msra.mxu3 %v1419_v3 }
 0x567   :  { %861 = vmatpush.msra.mxu3 %v1427_v5 }
 0x569   :  { %862 = vmatpush.msra.mxu3 %v1436_v7 }
 0x5cc   :  { %v554_v4 = vpop.permute.xlu0 %553 }
 0x5cd   :  { %v556_v59 = vsel %vm56_vm0, %v551_v9, %v554_v4 }
 0x5ce   :  { %1170 = vmatmul.msk.f32.vlgmr.msra.gmra.mxu1 %vm208_vm6, %v556_v59 }
 0x5d2   :  { %v113_v59 = vpop.f32.mrf.mxu0 }
 0x5d3   :  { %v114_v11 = vadd.f32 %v1455_v10, %v113_v59 }
 0x5e5   :  { %v632_v13 = vpop.f32.mrf.mxu3 }
 0x5e6   :  { %v635_v14 = vadd.f32 %v632_v13, %v111_v12 }
 0x5e8   :  { %v1173_v15 = vmul.f32 -1.442695, %v635_v14 }
 0x5ea   :  { %1258 = vpow2.f32 %v1173_v15 }
 0x5f0   :  { %v1259_v34 = vpop.eup %1258 }
 0x5f1   :  { %v639_v37 = vadd.f32 1.0, %v1259_v34 }
 0x5f3   :  { %v651_v32 = vand.u32 2147483648, %v639_v37  ;;  %vm645_vm10 = vweird.f32 %v639_v37  ;;  %v649_v42 = vand.u32 2147483647, %v639_v37 }
 0x5f5   :  { %v652_v44 = vor.u32 1.1754944e-38, %v651_v32  ;;  %vm650_vm12 = vcmp.eq.f32.partialorder %v649_v42, 8.507059e+37  ;;  %v46_v42 = vld [vmem:[%s1869_s0 + $0x30] sm:$0xff] }
 0x5f6   :  { %1152 = vmatmul.msk.f32.gmra.mxu0 %vm56_vm0, %v46_v42 }
 0x64b   :  { %v577_v33 = vpop.f32.mrf.mxu1 }
 0x64c   :  { %v578_v16 = vadd.f32 %v1595_v57, %v577_v33 }
 0x64e   :  { %v1171_v35 = vmul.f32 -1.442695, %v578_v16 }
 0x650   :  { %1260 = vpow2.f32 %v1171_v35 }
 0x651   :  { %1262 = vrcp.f32 %v639_v37 }
 0x656   :  { %v1261_v17 = vpop.eup %1260 }
 0x657   :  { %v583_v38 = vadd.f32 1.0, %v1261_v17  ;;  %v1263_v39 = vpop.eup %1262 }
 0x658   :  { %v641_v40 = vmul.f32 %v1263_v39, %v639_v37  ;;  %vm646_vm9 = vweird.f32 %v1263_v39 }
 0x659   :  { %1264 = vrcp.f32 %v583_v38  ;;  %v595_v21 = vand.u32 2147483648, %v583_v38  ;;  %v593_v24 = vand.u32 2147483647, %v583_v38  ;;  %vm589_vm5 = vweird.f32 %v583_v38  ;;  %vm647_vm11 = vmor %vm645_vm10, %vm646_vm9 }
 0x65a   :  { %v642_v19 = vsub.f32 1.0, %v641_v40  ;;  %1266 = vtanh.f32 %v578_v16 }
 0x65b   :  { %v596_v27 = vor.u32 1.1754944e-38, %v595_v21  ;;  %vm594_vm8 = vcmp.eq.f32.partialorder %v593_v24, 8.507059e+37  ;;  %1268 = vtanh.f32 %v635_v14 }
 0x65c   :  { %v643_v25 = vmul.f32 %v1263_v39, %v642_v19 }
 0x65e   :  { %v644_v29 = vadd.f32 %v1263_v39, %v643_v25 }
 0x65f   :  { %v1265_v41 = vpop.eup %1264 }
 0x660   :  { %v585_v18 = vmul.f32 %v1265_v41, %v583_v38  ;;  %vm590_vm4 = vweird.f32 %v1265_v41  ;;  %v1267_v30 = vpop.eup %1266  ;;  %v648_v43 = vsel %vm647_vm11, %v1263_v39, %v644_v29 }
 0x661   :  { %vm591_vm7 = vmor %vm589_vm5, %vm590_vm4  ;;  %v653_v45 = vsel %vm650_vm12, %v652_v44, %v648_v43  ;;  %v1269_v46 = vpop.eup %1268 }
 0x662   :  { %v586_v20 = vsub.f32 1.0, %v585_v18  ;;  %v656_v47 = vsel %vm137_vm3, %v653_v45, %v1269_v46 }
 0x664   :  { %v587_v23 = vmul.f32 %v1265_v41, %v586_v20 }
 0x666   :  { %v588_v26 = vadd.f32 %v1265_v41, %v587_v23 }
 0x668   :  { %v592_v28 = vsel %vm591_vm7, %v1265_v41, %v588_v26 }
 0x669   :  { %v597_v31 = vsel %vm594_vm8, %v596_v27, %v592_v28 }
 0x66a   :  { %v600_v36 = vsel %vm137_vm3, %v597_v31, %v1267_v30 }
 0x66b   :  { %603 = vrot.lane.b32.xlu0 %v600_v36, %s1336_s23  ;;  %605 = vrot.lane.b32.xlu2 %v600_v36, %s1338_s27 }
 0x66c   :  { %601 = vrot.lane.b32.xlu1 %v600_v36, %s1337_s24 }
 0x673   :  { %659 = vrot.lane.b32.xlu0 %v656_v47, %s1336_s23  ;;  %661 = vrot.lane.b32.xlu2 %v656_v47, %s1338_s27 }
 0x674   :  { %657 = vrot.lane.b32.xlu1 %v656_v47, %s1337_s24 }
 0x6c5   :  { %v606_v51 = vpop.permute.xlu2 %605 }
 0x6c6   :  { %v608_v53 = vmul.f32 %v606_v51, %v600_v36 }
 0x6cd   :  { %v662_v61 = vpop.permute.xlu2 %661 }
 0x6ce   :  { %v664_v49 = vmul.f32 %v662_v61, %v656_v47 }
 0x6dd   :  { %v604_v63 = vpop.permute.xlu0 %603 }
 0x6de   :  { %v602_v52 = vpop.permute.xlu1 %601 }
 0x6df   :  { %v607_v55 = vmul.f32 %v602_v52, %v1695_v58 }
 0x6e1   :  { %v1727_v56 = vadd.f32 %v608_v53, %v607_v55 }
 0x6e3   :  { %1270 = vtanh.f32 %v1727_v56 }
 0x6e5   :  { %v660_v58 = vpop.permute.xlu0 %659 }
 0x6e6   :  { %v658_v62 = vpop.permute.xlu1 %657 }
 0x6e7   :  { %v663_v0 = vmul.f32 %v658_v62, %v1699_v6 }
 0x6e9   :  { %v1271_v1 = vpop.eup %1270  ;;  %v1731_v48 = vadd.f32 %v664_v49, %v663_v0 }
 0x6ea   :  { %v611_v8 = vmul.f32 %v1271_v1, %v604_v63 }
 0x6eb   :  { %1272 = vtanh.f32 %v1731_v48 }
 0x6ec   :  { %669 = vrot.lane.b32.xlu1 %v611_v8, %s1338_s27 }
 0x6f1   :  { %v1273_v60 = vpop.eup %1272 }
 0x6f2   :  { %v667_v9 = vmul.f32 %v1273_v60, %v660_v58  ;;  %v1773_v60 = vld [vmem:[%s1871_s5] ss:$0 sm:$0xff] }
 0x6f4   :  { %1176 = vmatmul.msk.f32.vlgmr.msrb.gmra.mxu3 %vm56_vm0, %v667_v9 }
 0x6f5   :  { %975 = vmatpush.msrb.mxu3 %v1413_v2 }
 0x6f7   :  { %976 = vmatpush.msrb.mxu3 %v1419_v3 }
 0x6f9   :  { %977 = vmatpush.msrb.mxu3 %v1427_v5 }
 0x6fb   :  { %978 = vmatpush.msrb.mxu3 %v1436_v7 }
 0x75e   :  { %v670_v6 = vpop.permute.xlu1 %669 }
 0x75f   :  { %v672_v4 = vsel %vm56_vm0, %v667_v9, %v670_v6 }
 0x760   :  { %1174 = vmatmul.msk.f32.vlgmr.msra.gmra.mxu2 %vm208_vm6, %v672_v4 }
 0x777   :  { %v748_v12 = vpop.f32.mrf.mxu3 }
 0x778   :  { %v751_v13 = vadd.f32 %v748_v12, %v114_v11 }
 0x77a   :  { %v1177_v14 = vmul.f32 -1.442695, %v751_v13 }
 0x77c   :  { %1274 = vpow2.f32 %v1177_v14 }
 0x782   :  { %v1275_v2 = vpop.eup %1274 }
 0x783   :  { %v755_v5 = vadd.f32 1.0, %v1275_v2 }
 0x785   :  { %v767_v26 = vand.u32 2147483648, %v755_v5  ;;  %vm761_vm4 = vweird.f32 %v755_v5  ;;  %v765_v28 = vand.u32 2147483647, %v755_v5 }
 0x787   :  { %v768_v30 = vor.u32 1.1754944e-38, %v767_v26  ;;  %vm766_vm7 = vcmp.eq.f32.partialorder %v765_v28, 8.507059e+37 }
 0x7e3   :  { %v693_v15 = vpop.f32.mrf.mxu2 }
 0x7e4   :  { %v694_v3 = vadd.f32 %v1595_v57, %v693_v15 }
 0x7e6   :  { %v1175_v33 = vmul.f32 -1.442695, %v694_v3 }
 0x7e8   :  { %1276 = vpow2.f32 %v1175_v33 }
 0x7e9   :  { %1278 = vrcp.f32 %v755_v5 }
 0x7ee   :  { %v1277_v7 = vpop.eup %1276 }
 0x7ef   :  { %v699_v34 = vadd.f32 1.0, %v1277_v7  ;;  %v1279_v16 = vpop.eup %1278 }
 0x7f0   :  { %v757_v35 = vmul.f32 %v1279_v16, %v755_v5  ;;  %vm762_vm2 = vweird.f32 %v1279_v16 }
 0x7f1   :  { %1280 = vrcp.f32 %v699_v34  ;;  %v711_v39 = vand.u32 2147483648, %v699_v34  ;;  %v709_v41 = vand.u32 2147483647, %v699_v34  ;;  %vm705_vm14 = vweird.f32 %v699_v34  ;;  %vm763_vm5 = vmor %vm761_vm4, %vm762_vm2 }
 0x7f2   :  { %v758_v10 = vsub.f32 1.0, %v757_v35  ;;  %1282 = vtanh.f32 %v694_v3 }
 0x7f3   :  { %v712_v20 = vor.u32 1.1754944e-38, %v711_v39  ;;  %vm710_vm1 = vcmp.eq.f32.partialorder %v709_v41, 8.507059e+37  ;;  %1284 = vtanh.f32 %v751_v13 }
 0x7f4   :  { %v759_v18 = vmul.f32 %v1279_v16, %v758_v10 }
 0x7f6   :  { %v760_v23 = vadd.f32 %v1279_v16, %v759_v18 }
 0x7f7   :  { %v1281_v37 = vpop.eup %1280 }
 0x7f8   :  { %v701_v17 = vmul.f32 %v1281_v37, %v699_v34  ;;  %vm706_vm13 = vweird.f32 %v1281_v37  ;;  %v1283_v24 = vpop.eup %1282  ;;  %v764_v29 = vsel %vm763_vm5, %v1279_v16, %v760_v23 }
 0x7f9   :  { %vm707_vm15 = vmor %vm705_vm14, %vm706_vm13  ;;  %v769_v31 = vsel %vm766_vm7, %v768_v30, %v764_v29  ;;  %v1285_v32 = vpop.eup %1284 }
 0x7fa   :  { %v702_v38 = vsub.f32 1.0, %v701_v17  ;;  %v772_v36 = vsel %vm137_vm3, %v769_v31, %v1285_v32 }
 0x7fc   :  { %v703_v40 = vmul.f32 %v1281_v37, %v702_v38 }
 0x7fe   :  { %v704_v19 = vadd.f32 %v1281_v37, %v703_v40 }
 0x800   :  { %v708_v21 = vsel %vm707_vm15, %v1281_v37, %v704_v19 }
 0x801   :  { %v713_v25 = vsel %vm710_vm1, %v712_v20, %v708_v21 }
 0x802   :  { %v716_v27 = vsel %vm137_vm3, %v713_v25, %v1283_v24 }
 0x803   :  { %719 = vrot.lane.b32.xlu1 %v716_v27, %s1336_s23  ;;  %721 = vrot.lane.b32.xlu0 %v716_v27, %s1338_s27 }
 0x804   :  { %717 = vrot.lane.b32.xlu2 %v716_v27, %s1337_s24 }
 0x80b   :  { %775 = vrot.lane.b32.xlu1 %v772_v36, %s1336_s23  ;;  %777 = vrot.lane.b32.xlu0 %v772_v36, %s1338_s27 }
 0x80c   :  { %773 = vrot.lane.b32.xlu2 %v772_v36, %s1337_s24 }
 0x85e   :  { %v718_v43 = vpop.permute.xlu2 %717 }
 0x85f   :  { %v723_v45 = vmul.f32 %v718_v43, %v1727_v56 }
 0x866   :  { %v774_v50 = vpop.permute.xlu2 %773 }
 0x867   :  { %v779_v52 = vmul.f32 %v774_v50, %v1731_v48  ;;  %v116_v48 = vpop.f32.mrf.mxu0 }
 0x868   :  { %v117_v58 = vadd.f32 %v1773_v60, %v116_v48 }
 0x875   :  { %v722_v44 = vpop.permute.xlu0 %721  ;;  %v720_v53 = vpop.permute.xlu1 %719 }
 0x876   :  { %v724_v46 = vmul.f32 %v722_v44, %v716_v27 }
 0x878   :  { %v1759_v47 = vadd.f32 %v724_v46, %v723_v45 }
 0x87a   :  { %1286 = vtanh.f32 %v1759_v47 }
 0x87d   :  { %v778_v51 = vpop.permute.xlu0 %777  ;;  %v776_v63 = vpop.permute.xlu1 %775 }
 0x87e   :  { %v780_v55 = vmul.f32 %v778_v51, %v772_v36 }
 0x880   :  { %v1287_v61 = vpop.eup %1286  ;;  %v1763_v62 = vadd.f32 %v780_v55, %v779_v52 }
 0x881   :  { %v727_v49 = vmul.f32 %v1287_v61, %v720_v53 }
 0x882   :  { %1288 = vtanh.f32 %v1763_v62 }
 0x883   :  { %785 = vrot.lane.b32.xlu2 %v727_v49, %s1338_s27 }
 0x888   :  { %v1289_v56 = vpop.eup %1288 }
 0x889   :  { %v783_v0 = vmul.f32 %v1289_v56, %v776_v63 }
 0x88b   :  { %1180 = vmatmul.msk.f32.vlgmr.msra.gmra.mxu3 %vm56_vm0, %v783_v0 }
 0x8dd   :  { %v786_v1 = vpop.permute.xlu2 %785 }
 0x8de   :  { %v788_v8 = vsel %vm56_vm0, %v783_v0, %v786_v1 }
 0x8df   :  { %1178 = vmatmul.msk.f32.vlgmr.msrb.gmra.mxu1 %vm208_vm6, %v788_v8  ;;  %v1804_v8 = vld [vmem:[%s1874_s7] ss:$0 sm:$0xff] }
 0x90e   :  { %v864_v9 = vpop.f32.mrf.mxu3 }
 0x90f   :  { %v867_v6 = vadd.f32 %v864_v9, %v117_v58 }
 0x911   :  { %v1181_v4 = vmul.f32 -1.442695, %v867_v6 }
 0x913   :  { %1290 = vpow2.f32 %v1181_v4 }
 0x919   :  { %v1291_v11 = vpop.eup %1290 }
 0x91a   :  { %v871_v14 = vadd.f32 1.0, %v1291_v11 }
 0x91c   :  { %v883_v19 = vand.u32 2147483648, %v871_v14  ;;  %vm877_vm13 = vweird.f32 %v871_v14  ;;  %v881_v21 = vand.u32 2147483647, %v871_v14 }
 0x91e   :  { %v884_v24 = vor.u32 1.1754944e-38, %v883_v19  ;;  %vm882_vm15 = vcmp.eq.f32.partialorder %v881_v21, 8.507059e+37 }
 0x95c   :  { %v809_v59 = vpop.f32.mrf.mxu1 }
 0x95d   :  { %v810_v12 = vadd.f32 %v1595_v57, %v809_v59 }
 0x95f   :  { %v1179_v13 = vmul.f32 -1.442695, %v810_v12 }
 0x961   :  { %1292 = vpow2.f32 %v1179_v13 }
 0x962   :  { %1294 = vrcp.f32 %v871_v14 }
 0x967   :  { %v1293_v15 = vpop.eup %1292 }
 0x968   :  { %v815_v2 = vadd.f32 1.0, %v1293_v15  ;;  %v1295_v3 = vpop.eup %1294 }
 0x969   :  { %v873_v33 = vmul.f32 %v1295_v3, %v871_v14  ;;  %vm878_vm12 = vweird.f32 %v1295_v3 }
 0x96a   :  { %1296 = vrcp.f32 %v815_v2  ;;  %v827_v35 = vand.u32 2147483648, %v815_v2  ;;  %v825_v17 = vand.u32 2147483647, %v815_v2  ;;  %vm821_vm9 = vweird.f32 %v815_v2  ;;  %vm879_vm14 = vmor %vm877_vm13, %vm878_vm12 }
 0x96b   :  { %v874_v34 = vsub.f32 1.0, %v873_v33  ;;  %1298 = vtanh.f32 %v810_v12 }
 0x96c   :  { %v828_v38 = vor.u32 1.1754944e-38, %v827_v35  ;;  %vm826_vm11 = vcmp.eq.f32.partialorder %v825_v17, 8.507059e+37  ;;  %1300 = vtanh.f32 %v867_v6 }
 0x96d   :  { %v875_v10 = vmul.f32 %v1295_v3, %v874_v34 }
 0x96f   :  { %v876_v40 = vadd.f32 %v1295_v3, %v875_v10 }
 0x970   :  { %v1297_v5 = vpop.eup %1296 }
 0x971   :  { %v817_v7 = vmul.f32 %v1297_v5, %v815_v2  ;;  %vm822_vm8 = vweird.f32 %v1297_v5  ;;  %v1299_v41 = vpop.eup %1298  ;;  %v880_v23 = vsel %vm879_vm14, %v1295_v3, %v876_v40 }
 0x972   :  { %vm823_vm10 = vmor %vm821_vm9, %vm822_vm8  ;;  %v885_v25 = vsel %vm882_vm15, %v884_v24, %v880_v23  ;;  %v1301_v26 = vpop.eup %1300 }
 0x973   :  { %v818_v16 = vsub.f32 1.0, %v817_v7  ;;  %v888_v27 = vsel %vm137_vm3, %v885_v25, %v1301_v26 }
 0x975   :  { %v819_v37 = vmul.f32 %v1297_v5, %v818_v16 }
 0x977   :  { %v820_v57 = vadd.f32 %v1297_v5, %v819_v37 }
 0x979   :  { %v824_v39 = vsel %vm823_vm10, %v1297_v5, %v820_v57 }
 0x97a   :  { %v829_v18 = vsel %vm826_vm11, %v828_v38, %v824_v39 }
 0x97b   :  { %v832_v20 = vsel %vm137_vm3, %v829_v18, %v1299_v41 }
 0x97c   :  { %835 = vrot.lane.b32.xlu2 %v832_v20, %s1336_s23  ;;  %837 = vrot.lane.b32.xlu1 %v832_v20, %s1338_s27 }
 0x97d   :  { %833 = vrot.lane.b32.xlu0 %v832_v20, %s1337_s24 }
 0x984   :  { %891 = vrot.lane.b32.xlu2 %v888_v27, %s1336_s23  ;;  %893 = vrot.lane.b32.xlu1 %v888_v27, %s1338_s27 }
 0x985   :  { %889 = vrot.lane.b32.xlu0 %v888_v27, %s1337_s24 }
 0x9d6   :  { %v836_v44 = vpop.permute.xlu2 %835 }
 0x9ee   :  { %v838_v28 = vpop.permute.xlu1 %837 }
 0x9ef   :  { %v840_v29 = vmul.f32 %v838_v28, %v832_v20  ;;  %v834_v30 = vpop.permute.xlu0 %833 }
 0x9f0   :  { %v839_v31 = vmul.f32 %v834_v30, %v1759_v47  ;;  %v892_v47 = vpop.permute.xlu2 %891 }
 0x9f2   :  { %v1788_v32 = vadd.f32 %v840_v29, %v839_v31 }
 0x9f4   :  { %1302 = vtanh.f32 %v1788_v32 }
 0x9f6   :  { %v894_v36 = vpop.permute.xlu1 %893 }
 0x9f7   :  { %v896_v42 = vmul.f32 %v894_v36, %v888_v27  ;;  %v890_v43 = vpop.permute.xlu0 %889 }
 0x9f8   :  { %v895_v45 = vmul.f32 %v890_v43, %v1763_v62  ;;  %v120_v62 = vadd.f32 %v1773_v60, %v1589_v54 }
 0x9fa   :  { %v1303_v46 = vpop.eup %1302  ;;  %v1792_v50 = vadd.f32 %v896_v42, %v895_v45 }
 0x9fb   :  { %v843_v51 = vmul.f32 %v1303_v46, %v836_v44 }
 0x9fc   :  { %1304 = vtanh.f32 %v1792_v50 }
 0x9fd   :  { %901 = vrot.lane.b32.xlu0 %v843_v51, %s1338_s27 }
 0xa02   :  { %v1305_v52 = vpop.eup %1304 }
 0xa03   :  { %v899_v53 = vmul.f32 %v1305_v52, %v892_v47 }
 0xa05   :  { %1184 = vmatmul.msk.f32.vlgmr.msrb.gmra.mxu3 %vm56_vm0, %v899_v53 }
 0xa6f   :  { %v902_v55 = vpop.permute.xlu0 %901 }
 0xa70   :  { %v904_v61 = vsel %vm56_vm0, %v899_v53, %v902_v55 }
 0xa71   :  { %1182 = vmatmul.msk.f32.vlgmr.msrb.gmra.mxu2 %vm208_vm6, %v904_v61 }
 0xa88   :  { %v980_v49 = vpop.f32.mrf.mxu3 }
 0xa89   :  { %v983_v56 = vadd.f32 %v980_v49, %v120_v62 }
 0xa8b   :  { %v1185_v63 = vmul.f32 -1.442695, %v983_v56 }
 0xa8d   :  { %1306 = vpow2.f32 %v1185_v63 }
 0xa93   :  { %v1307_v1 = vpop.eup %1306 }
 0xa94   :  { %v987_v9 = vadd.f32 1.0, %v1307_v1 }
 0xa96   :  { %v999_v37 = vand.u32 2147483648, %v987_v9  ;;  %vm993_vm8 = vweird.f32 %v987_v9  ;;  %v997_v10 = vand.u32 2147483647, %v987_v9 }
 0xa98   :  { %v1000_v38 = vor.u32 1.1754944e-38, %v999_v37  ;;  %vm998_vm10 = vcmp.eq.f32.partialorder %v997_v10, 8.507059e+37 }
 0xaf4   :  { %v925_v0 = vpop.f32.mrf.mxu2 }
 0xaf5   :  { %v926_v48 = vadd.f32 %v1804_v8, %v925_v0 }
 0xaf7   :  { %v1183_v58 = vmul.f32 -1.442695, %v926_v48 }
 0xaf9   :  { %1308 = vpow2.f32 %v1183_v58  ;;  %v1085_v58 = vld [vmem:[%s1877_s8 + $0x18] sm:$0xff] }
 0xafa   :  { %1310 = vrcp.f32 %v987_v9  ;;  %1105 = vmatpush.msra.mxu1 %v1085_v58 }
 0xaff   :  { %v1309_v6 = vpop.eup %1308 }
 0xb00   :  { %v931_v4 = vadd.f32 1.0, %v1309_v6  ;;  %v1311_v59 = vpop.eup %1310  ;;  %v1082_v6 = vld [vmem:[%s1877_s8] sm:$0xff] }
 0xb01   :  { %v989_v54 = vmul.f32 %v1311_v59, %v987_v9  ;;  %vm994_vm7 = vweird.f32 %v1311_v59  ;;  %v1084_v9 = vld [vmem:[%s1877_s8 + $0x10] sm:$0xff] }
 0xb02   :  { %1312 = vrcp.f32 %v931_v4  ;;  %v943_v14 = vand.u32 2147483648, %v931_v4  ;;  %v941_v2 = vand.u32 2147483647, %v931_v4  ;;  %vm937_vm2 = vweird.f32 %v931_v4  ;;  %vm995_vm9 = vmor %vm993_vm8, %vm994_vm7  ;;  %1106 = vmatpush.msra.mxu1 %v1084_v9 }
 0xb03   :  { %v990_v12 = vsub.f32 1.0, %v989_v54  ;;  %1314 = vtanh.f32 %v926_v48 }
 0xb04   :  { %v944_v5 = vor.u32 1.1754944e-38, %v943_v14  ;;  %vm942_vm5 = vcmp.eq.f32.partialorder %v941_v2, 8.507059e+37  ;;  %1316 = vtanh.f32 %v983_v56  ;;  %1107 = vmatpush.msra.mxu1 %v1083_v22 }
 0xb05   :  { %v991_v3 = vmul.f32 %v1311_v59, %v990_v12 }
 0xb06   :  { %1108 = vmatpush.msra.mxu1 %v1082_v6 }
 0xb07   :  { %v992_v34 = vadd.f32 %v1311_v59, %v991_v3 }
 0xb08   :  { %v1313_v60 = vpop.eup %1312 }
 0xb09   :  { %v933_v11 = vmul.f32 %v1313_v60, %v931_v4  ;;  %vm938_vm1 = vweird.f32 %v1313_v60  ;;  %v1315_v16 = vpop.eup %1314  ;;  %v996_v57 = vsel %vm995_vm9, %v1311_v59, %v992_v34  ;;  %v18_v4 = vstv %s1878_s9 }
 0xb0a   :  { %vm939_vm4 = vmor %vm937_vm2, %vm938_vm1  ;;  %v1001_v39 = vsel %vm998_vm10, %v1000_v38, %v996_v57  ;;  %v1317_v40 = vpop.eup %1316  ;;  %19 = vst [vmem:[#allocation2] sm:$0x1] %v18_v4 }
 0xb0b   :  { %v934_v13 = vsub.f32 1.0, %v933_v11  ;;  %v1004_v41 = vsel %vm137_vm3, %v1001_v39, %v1317_v40 }
 0xb0d   :  { %v935_v15 = vmul.f32 %v1313_v60, %v934_v13 }
 0xb0f   :  { %v936_v33 = vadd.f32 %v1313_v60, %v935_v15 }
 0xb11   :  { %v940_v7 = vsel %vm939_vm4, %v1313_v60, %v936_v33  ;;  %v1201_v2 = vld [vmem:[#allocation2] ss:$0 sm:$0xff] }
 0xb12   :  { %v945_v35 = vsel %vm942_vm5, %v944_v5, %v940_v7 }
 0xb13   :  { %v948_v17 = vsel %vm137_vm3, %v945_v35, %v1315_v16 }
 0xb14   :  { %951 = vrot.lane.b32.xlu0 %v948_v17, %s1336_s23  ;;  %953 = vrot.lane.b32.xlu2 %v948_v17, %s1338_s27 }
 0xb15   :  { %949 = vrot.lane.b32.xlu1 %v948_v17, %s1337_s24 }
 0xb1c   :  { %1007 = vrot.lane.b32.xlu0 %v1004_v41, %s1336_s23  ;;  %1009 = vrot.lane.b32.xlu2 %v1004_v41, %s1338_s27 }
 0xb1d   :  { %1005 = vrot.lane.b32.xlu1 %v1004_v41, %s1337_s24 }
 0xb6e   :  { %v954_v18 = vpop.permute.xlu2 %953 }
 0xb6f   :  { %v956_v20 = vmul.f32 %v954_v18, %v948_v17 }
 0xb76   :  { %v1010_v24 = vpop.permute.xlu2 %1009 }
 0xb77   :  { %v1012_v26 = vmul.f32 %v1010_v24, %v1004_v41 }
 0xb86   :  { %v952_v27 = vpop.permute.xlu0 %951 }
 0xb87   :  { %v950_v19 = vpop.permute.xlu1 %949 }
 0xb88   :  { %v955_v21 = vmul.f32 %v950_v19, %v1788_v32 }
 0xb8a   :  { %v1818_v23 = vadd.f32 %v956_v20, %v955_v21 }
 0xb8c   :  { %1318 = vtanh.f32 %v1818_v23 }
 0xb8e   :  { %v1008_v36 = vpop.permute.xlu0 %1007 }
 0xb8f   :  { %v1006_v25 = vpop.permute.xlu1 %1005 }
 0xb90   :  { %v1011_v28 = vmul.f32 %v1006_v25, %v1792_v50 }
 0xb92   :  { %v1319_v29 = vpop.eup %1318  ;;  %v1013_v30 = vadd.f32 %v1012_v26, %v1011_v28 }
 0xb93   :  { %v959_v31 = vmul.f32 %v1319_v29, %v952_v27 }
 0xb94   :  { %1320 = vtanh.f32 %v1013_v30  ;;  %1077 = vst.msk [vmem:[%s1875_s12] sm:$0xff] %vm56_vm0, %v1013_v30 }
 0xb95   :  { %1017 = vrot.lane.b32.xlu1 %v959_v31, %s1338_s27 }
 0xb9a   :  { %v1321_v32 = vpop.eup %1320 }
 0xb9b   :  { %v1015_v42 = vmul.f32 %v1321_v32, %v1008_v36 }
 0xb9d   :  { %1076 = vst.msk [vmem:[%s1876_s11] sm:$0xff] %vm56_vm0, %v1015_v42 }
 0xc07   :  { %v1018_v43 = vpop.permute.xlu1 %1017 }
 0xc08   :  { %v1020_v44 = vsel %vm56_vm0, %v1015_v42, %v1018_v43 }
 0xc09   :  { %1186 = vmatmul.msk.f32.vlgmr.msrb.gmra.mxu0 %vm208_vm6, %v1020_v44 }
 0xc86   :  { %v1041_v45 = vpop.f32.mrf.mxu0 }
 0xc87   :  { %v1042_v46 = vadd.f32 %v1804_v8, %v1041_v45 }
 0xc89   :  { %v1187_v50 = vmul.f32 -1.442695, %v1042_v46 }
 0xc8b   :  { %1322 = vpow2.f32 %v1187_v50 }
 0xc91   :  { %v1323_v51 = vpop.eup %1322 }
 0xc92   :  { %v1047_v52 = vadd.f32 1.0, %v1323_v51 }
 0xc94   :  { %1324 = vrcp.f32 %v1047_v52  ;;  %v1059_v61 = vand.u32 2147483648, %v1047_v52  ;;  %v1057_v62 = vand.u32 2147483647, %v1047_v52  ;;  %vm1053_vm12 = vweird.f32 %v1047_v52 }
 0xc95   :  { %1326 = vtanh.f32 %v1042_v46 }
 0xc96   :  { %v1060_v63 = vor.u32 1.1754944e-38, %v1059_v61  ;;  %vm1058_vm6 = vcmp.eq.f32.partialorder %v1057_v62, 8.507059e+37 }
 0xc9a   :  { %v1325_v47 = vpop.eup %1324 }
 0xc9b   :  { %v1049_v53 = vmul.f32 %v1325_v47, %v1047_v52  ;;  %vm1054_vm11 = vweird.f32 %v1325_v47  ;;  %v1327_v1 = vpop.eup %1326 }
 0xc9c   :  { %vm1055_vm13 = vmor %vm1053_vm12, %vm1054_vm11 }
 0xc9d   :  { %v1050_v55 = vsub.f32 1.0, %v1049_v53 }
 0xc9f   :  { %v1051_v49 = vmul.f32 %v1325_v47, %v1050_v55 }
 0xca1   :  { %v1052_v56 = vadd.f32 %v1325_v47, %v1051_v49 }
 0xca3   :  { %v1056_v0 = vsel %vm1055_vm13, %v1325_v47, %v1052_v56 }
 0xca4   :  { %v1061_v8 = vsel %vm1058_vm6, %v1060_v63, %v1056_v0 }
 0xca5   :  { %v1064_v48 = vsel %vm137_vm3, %v1061_v8, %v1327_v1 }
 0xca6   :  { %1067 = vrot.lane.b32.xlu1 %v1064_v48, %s1336_s23  ;;  %1069 = vrot.lane.b32.xlu0 %v1064_v48, %s1338_s27 }
 0xca7   :  { %1065 = vrot.lane.b32.xlu2 %v1064_v48, %s1337_s24 }
 0xd01   :  { %v1066_v59 = vpop.permute.xlu2 %1065 }
 0xd02   :  { %v1071_v60 = vmul.f32 %v1066_v59, %v1818_v23 }
 0xd18   :  { %v1070_v54 = vpop.permute.xlu0 %1069  ;;  %v1068_v14 = vpop.permute.xlu1 %1067 }
 0xd19   :  { %v1072_v11 = vmul.f32 %v1070_v54, %v1064_v48 }
 0xd1b   :  { %v1073_v12 = vadd.f32 %v1072_v11, %v1071_v60 }
 0xd1d   :  { %1328 = vtanh.f32 %v1073_v12  ;;  %1189 = vst.msk [vmem:[%s1875_s12 + $0x8] sm:$0xff] %vm56_vm0, %v1073_v12 }
 0xd23   :  { %v1329_v13 = vpop.eup %1328 }
 0xd24   :  { %v1075_v15 = vmul.f32 %v1329_v13, %v1068_v14 }
 0xd26   :  { %1188 = vst.msk [vmem:[%s1876_s11 + $0x8] sm:$0xff] %vm56_vm0, %v1075_v15  ;;  %1190 = vmatmul.msk.f32.vlgmr.msra.gmra.mxu1 %vm56_vm0, %v1075_v15  ;;  %vm1132_vm0 = vcmask 7168  }
 0xda3   :  { %v1110_v3 = vpop.f32.mrf.mxu1 }
 0xda4   :  { %v1111_v33 = vadd.f32 %v1201_v2, %v1110_v3 }
 0xda6   :  { %v1191_v5 = vmul.f32 -1.442695, %v1111_v33 }
 0xda8   :  { %1330 = vpow2.f32 %v1191_v5 }
 0xdae   :  { %v1331_v7 = vpop.eup %1330 }
 0xdaf   :  { %v1116_v34 = vadd.f32 1.0, %v1331_v7 }
 0xdb1   :  { %1332 = vrcp.f32 %v1116_v34  ;;  %v1128_v17 = vand.u32 2147483648, %v1116_v34  ;;  %v1126_v57 = vand.u32 2147483647, %v1116_v34  ;;  %vm1122_vm14 = vweird.f32 %v1116_v34 }
 0xdb3   :  { %v1129_v39 = vor.u32 1.1754944e-38, %v1128_v17  ;;  %vm1127_vm1 = vcmp.eq.f32.partialorder %v1126_v57, 8.507059e+37 }
 0xdb7   :  { %v1333_v16 = vpop.eup %1332 }
 0xdb8   :  { %v1118_v35 = vmul.f32 %v1333_v16, %v1116_v34  ;;  %vm1123_vm3 = vweird.f32 %v1333_v16 }
 0xdb9   :  { %vm1124_vm15 = vmor %vm1122_vm14, %vm1123_vm3 }
 0xdba   :  { %v1119_v37 = vsub.f32 1.0, %v1118_v35 }
 0xdbc   :  { %v1120_v10 = vmul.f32 %v1333_v16, %v1119_v37 }
 0xdbe   :  { %v1121_v38 = vadd.f32 %v1333_v16, %v1120_v10 }
 0xdc0   :  { %v1125_v40 = vsel %vm1124_vm15, %v1333_v16, %v1121_v38 }
 0xdc1   :  { %v1130_v41 = vsel %vm1127_vm1, %v1129_v39, %v1125_v40 }
 0xdc2   :  { %1133 = vst.msk [vmem:[%s1879_s10] sm:$0xff] %vm1132_vm0, %v1130_v41 }

</bundles_post_ra>
